<compile_context>
chip_gen: v5e
topology: v5e:2x2
jax: 0.10.0
libtpu: 0.0.40
codegen_flags: <defaults>
</compile_context>

<pallas_src>
import functools

import jax
import jax.numpy as jnp
import numpy as np
from jax.experimental import pallas as pl
from jax.experimental.pallas import tpu as pltpu


# ----------------------------------------------------------------------------
# Pass A kernel: online k-softmax + cross-head context accumulation
# ----------------------------------------------------------------------------
def _context_kernel(x_ref, wkv_t_ref, mask_ref, cb_ref, m_sc, l_sc, cf_sc,
                    *, heads, dim_head, dim, eps=1e-12):
    nc = pl.program_id(1)
    hidden = heads * dim_head
    sqrt_dim = jnp.float32(dim) ** 0.5
    eps_sq = jnp.float32(eps * eps)

    @pl.when(nc == 0)
    def _():
        m_sc[...] = jnp.full_like(m_sc, -jnp.inf)
        l_sc[...] = jnp.zeros_like(l_sc)
        cf_sc[...] = jnp.zeros_like(cf_sc)

    # x chunk: (1, C, TN) -- channels on sublanes, spatial positions on lanes
    x = x_ref[0].astype(jnp.float32)                           # (C, TN)
    ss = jnp.sum(x * x, axis=0, keepdims=True)                 # (1, TN)
    xn = x * (sqrt_dim * jax.lax.rsqrt(jnp.maximum(ss, eps_sq)))
    # norm.g is folded into the weight rows in the wrapper; weights arrive bf16.
    kv = jax.lax.dot_general(
        wkv_t_ref[...], xn.astype(jnp.bfloat16),
        dimension_numbers=(((0,), (0,)), ((), ())),
        preferred_element_type=jnp.float32)                    # (2*hidden, TN): k then v
    k = kv[:hidden]
    v = kv[hidden:]

    # Online softmax over the spatial axis (lanes), per k row.
    m_prev = m_sc[...]                                         # (hidden, 1)
    m_new = jnp.maximum(m_prev, jnp.max(k, axis=-1, keepdims=True))
    alpha = jnp.exp(m_prev - m_new)
    p = jnp.exp(k - m_new)                                     # (hidden, TN)
    l_sc[...] = alpha * l_sc[...] + jnp.sum(p, axis=-1, keepdims=True)
    cf_sc[...] = alpha * cf_sc[...] + jax.lax.dot_general(
        p.astype(jnp.bfloat16), v.astype(jnp.bfloat16),
        dimension_numbers=(((1,), (1,)), ((), ())),
        preferred_element_type=jnp.float32)                    # (hidden, hidden)
    m_sc[...] = m_new

    @pl.when(nc == pl.num_programs(1) - 1)
    def _():
        # mask_ref already contains scale on the per-head block diagonal, 0 elsewhere.
        inv_l = pl.reciprocal(l_sc[...], approx=True)          # (hidden, 1)
        cb_ref[0] = cf_sc[...] * inv_l * mask_ref[...]


# ----------------------------------------------------------------------------
# Pass B kernel: q softmax, attention output, to_out conv + bias, final RMSNorm
# ----------------------------------------------------------------------------
def _output_kernel(x_ref, cb_ref, wq_t_ref, wout_ref, bout_ref, g2_ref, o_ref,
                   *, heads, dim_head, dim, eps=1e-12):
    hidden = heads * dim_head
    sqrt_dim = jnp.float32(dim) ** 0.5
    eps_sq = jnp.float32(eps * eps)

    x = x_ref[0].astype(jnp.float32)                           # (C, TN)
    tn = x.shape[-1]
    ss = jnp.sum(x * x, axis=0, keepdims=True)
    xn = x * (sqrt_dim * jax.lax.rsqrt(jnp.maximum(ss, eps_sq)))

    # q half of to_qkv (norm.g folded into the bf16 weight rows in the wrapper)
    q = jax.lax.dot_general(
        wq_t_ref[...], xn.astype(jnp.bfloat16),
        dimension_numbers=(((0,), (0,)), ((), ())),
        preferred_element_type=jnp.float32)                    # (hidden, TN)

    # q softmax over dim_head within each head (sublane groups of dim_head)
    q3 = q.reshape(heads, dim_head, tn)
    qm = jnp.max(q3, axis=1, keepdims=True)
    qe = jnp.exp(q3 - qm)
    qs = jnp.sum(qe, axis=1, keepdims=True)
    qn = (qe * pl.reciprocal(qs, approx=True)).reshape(hidden, tn)

    # out[s, n] = sum_r cb[r, s] * qn[r, n]   (softmax scale already folded into cb)
    out = jax.lax.dot_general(
        cb_ref[0].astype(jnp.bfloat16), qn.astype(jnp.bfloat16),
        dimension_numbers=(((0,), (0,)), ((), ())),
        preferred_element_type=jnp.float32)                    # (hidden, TN)

    # to_out 1x1 conv with bias
    y = jax.lax.dot_general(
        wout_ref[...], out.astype(jnp.bfloat16),
        dimension_numbers=(((1,), (0,)), ((), ())),
        preferred_element_type=jnp.float32)                    # (C, TN)
    y = y + bout_ref[...]

    # final RMSNorm over channels
    ss2 = jnp.sum(y * y, axis=0, keepdims=True)
    yn = y * (sqrt_dim * jax.lax.rsqrt(jnp.maximum(ss2, eps_sq))) * g2_ref[...]
    o_ref[0] = yn.astype(o_ref.dtype)


# ----------------------------------------------------------------------------
# Wrapper
# ----------------------------------------------------------------------------
def _device_vmem_limit_bytes(est_bytes):
    try:
        cap = int(pltpu.get_tpu_info().vmem_capacity_bytes)
    except Exception:
        cap = 64 * 1024 * 1024  # conservative fallback (v7x has 64 MiB / TC)
    want = max(32 * 1024 * 1024, 2 * int(est_bytes))
    return int(min(want, int(0.8 * cap)))


def _pick_chunk(n):
    for cand in (2048, 1024, 512, 256, 128):
        if n % cand == 0:
            return cand
    return 128


def linear_attention_pallas(x_nchw, params, *, heads, dim_head):
    B, C, H, W = x_nchw.shape
    N = H * W
    hidden = heads * dim_head
    # TODO(synk): add a padding path for C % 8 != 0 or N % 128 != 0.
    assert C % 8 == 0 and N % 128 == 0, (C, N)

    TN = _pick_chunk(N)
    NC = N // TN

    # NCHW -> (B, C, N): contiguous reshape, no transpose on either side.
    x = x_nchw.reshape(B, C, N)

    g1 = params["norm_g"].reshape(C, 1).astype(jnp.float32)
    wqkv_t = params["to_qkv_w"].reshape(3 * hidden, C).T.astype(jnp.float32)  # (C, 3h)
    wqkv_t = wqkv_t * g1                                   # fold first RMSNorm gain
    wq_t = wqkv_t[:, :hidden].astype(jnp.bfloat16)         # (C, hidden)
    wkv_t = wqkv_t[:, hidden:].astype(jnp.bfloat16)        # (C, 2*hidden): k then v
    wout = params["to_out_w"].reshape(C, hidden).astype(jnp.bfloat16)
    bout = params["to_out_b"].reshape(C, 1).astype(jnp.float32)
    g2 = params["to_out_g"].reshape(C, 1).astype(jnp.float32)

    # Precomputed per-head block-diagonal mask with the softmax scale folded in.
    scale = jnp.float32(dim_head) ** -0.5
    rr = jnp.arange(hidden, dtype=jnp.int32)[:, None] // dim_head
    cc = jnp.arange(hidden, dtype=jnp.int32)[None, :] // dim_head
    mask = jnp.where(rr == cc, scale, jnp.float32(0.0))    # (hidden, hidden) f32

    itemsize = x.dtype.itemsize
    est = (2 * C * TN * itemsize                    # double-buffered x block
           + C * 3 * hidden * 2                     # bf16 weights
           + 3 * hidden * hidden * 4                # mask + context scratch/output
           + (3 * hidden * TN + 2 * C * TN) * 4)    # f32 intermediates
    vmem_limit = _device_vmem_limit_bytes(est)

    ctx_kernel = functools.partial(
        _context_kernel, heads=heads, dim_head=dim_head, dim=C)
    out_kernel = functools.partial(
        _output_kernel, heads=heads, dim_head=dim_head, dim=C)

    # Pass A: per-batch context (online k-softmax over N chunks).
    cb = pl.pallas_call(
        ctx_kernel,
        out_shape=jax.ShapeDtypeStruct((B, hidden, hidden), jnp.float32),
        grid=(B, NC),
        in_specs=[
            pl.BlockSpec((1, C, TN), lambda b, n: (b, 0, n)),        # x chunk
            pl.BlockSpec((C, 2 * hidden), lambda b, n: (0, 0)),      # k/v weights (bf16)
            pl.BlockSpec((hidden, hidden), lambda b, n: (0, 0)),     # scaled block-diag mask
        ],
        out_specs=pl.BlockSpec((1, hidden, hidden), lambda b, n: (b, 0, 0)),
        scratch_shapes=[
            pltpu.VMEM((hidden, 1), jnp.float32),      # running max m
            pltpu.VMEM((hidden, 1), jnp.float32),      # running denom l
            pltpu.VMEM((hidden, hidden), jnp.float32)  # unnormalized context cf
        ],
        compiler_params=pltpu.CompilerParams(
            dimension_semantics=("parallel", "arbitrary"),
            vmem_limit_bytes=vmem_limit),
    )(x, wkv_t, mask)

    # Pass B: per-chunk q softmax, attention output, to_out conv, final RMSNorm.
    out = pl.pallas_call(
        out_kernel,
        out_shape=jax.ShapeDtypeStruct((B, C, N), x_nchw.dtype),
        grid=(B, NC),
        in_specs=[
            pl.BlockSpec((1, C, TN), lambda b, n: (b, 0, n)),        # x chunk
            pl.BlockSpec((1, hidden, hidden), lambda b, n: (b, 0, 0)),  # context
            pl.BlockSpec((C, hidden), lambda b, n: (0, 0)),          # q weights (bf16)
            pl.BlockSpec((C, hidden), lambda b, n: (0, 0)),          # to_out W (bf16)
            pl.BlockSpec((C, 1), lambda b, n: (0, 0)),               # to_out bias
            pl.BlockSpec((C, 1), lambda b, n: (0, 0)),               # to_out norm g
        ],
        out_specs=pl.BlockSpec((1, C, TN), lambda b, n: (b, 0, n)),
        compiler_params=pltpu.CompilerParams(
            dimension_semantics=("parallel", "parallel"),
            vmem_limit_bytes=vmem_limit),
    )(x, cb, wq_t, wout, bout, g2)

    # (B, C, N) -> NCHW (free reshape)
    return out.reshape(B, C, H, W)


# ----------------------------------------------------------------------------
# Pure-JAX reference (mirrors the PyTorch forward, NCHW)
# ----------------------------------------------------------------------------
def linear_attention_ref(x, params, *, heads, dim_head):
    B, C, H, W = x.shape
    eps = 1e-12
    hidden = heads * dim_head

    def rmsnorm(t, g):
        n = jnp.sqrt(jnp.sum(t * t, axis=1, keepdims=True))
        return t / jnp.maximum(n, eps) * (C ** 0.5) * g

    xn = rmsnorm(x, params["norm_g"])
    wqkv = params["to_qkv_w"].reshape(3 * hidden, C)
    qkv = jnp.einsum('bchw,oc->bohw', xn, wqkv)
    q, k, v = jnp.split(qkv, 3, axis=1)
    q, k, v = (t.reshape(B, heads, dim_head, H * W) for t in (q, k, v))
    q = jax.nn.softmax(q, axis=-2)
    k = jax.nn.softmax(k, axis=-1)
    q = q * (dim_head ** -0.5)
    context = jnp.einsum('bhdn,bhen->bhde', k, v)
    out = jnp.einsum('bhde,bhdn->bhen', context, q)
    out = out.reshape(B, hidden, H, W)
    wout = params["to_out_w"].reshape(C, hidden)
    y = jnp.einsum('bchw,oc->bohw', out, wout) + params["to_out_b"].reshape(1, C, 1, 1)
    return rmsnorm(y, params["to_out_g"])


# ----------------------------------------------------------------------------
# Main
# ----------------------------------------------------------------------------
if __name__ == "__main__":
    B, dim, H, W = 2, 8, 16, 16
    heads, dim_head = 4, 32
    hidden = heads * dim_head

    key = jax.random.PRNGKey(0)
    kx, kqkv, kow, kob = jax.random.split(key, 4)

    x = jax.random.normal(kx, (B, dim, H, W), dtype=jnp.float32)

    params = {
        # RMSNorm g parameters initialize to ones (as in nn.Parameter(torch.ones(...)))
        "norm_g": jnp.ones((1, dim, 1, 1), jnp.float32),
        "to_qkv_w": 0.1 * jax.random.normal(kqkv, (3 * hidden, dim, 1, 1), jnp.float32),
        "to_out_w": 0.1 * jax.random.normal(kow, (dim, hidden, 1, 1), jnp.float32),
        "to_out_b": 0.1 * jax.random.normal(kob, (dim,), jnp.float32),
        "to_out_g": jnp.ones((1, dim, 1, 1), jnp.float32),
    }

    out = linear_attention_pallas(x, params, heads=heads, dim_head=dim_head)
    out = jax.block_until_ready(out)

    ref = jax.block_until_ready(
        linear_attention_ref(x, params, heads=heads, dim_head=dim_head))

    assert out.shape == (B, dim, H, W), out.shape
    # bf16 MXU operands with f32 accumulation; approx EUP reciprocal in softmax denoms.
    np.testing.assert_allclose(np.asarray(out), np.asarray(ref), rtol=2e-2, atol=2e-2)

    print("KERNEL_OK")
</pallas_src>

<mosaic_0001>
module attributes {stable_mosaic.version = 11 : i64} {
  func.func @_context_kernel(%arg0: i32, %arg1: i32, %arg2: memref<1x8x256xf32, #tpu.memory_space<vmem>>, %arg3: memref<8x256xbf16, #tpu.memory_space<vmem>>, %arg4: memref<128x128xf32, #tpu.memory_space<vmem>>, %arg5: memref<1x128x128xf32, #tpu.memory_space<vmem>>, %arg6: memref<128x1xf32, #tpu.memory_space<vmem>>, %arg7: memref<128x1xf32, #tpu.memory_space<vmem>>, %arg8: memref<128x128xf32, #tpu.memory_space<vmem>>) attributes {dimension_semantics = [#tpu.dimension_semantics<parallel>, #tpu.dimension_semantics<arbitrary>], iteration_bounds = array<i64: 2, 1>, scalar_prefetch = 0 : i64, scratch_operands = 3 : i64, tpu.core_type = #tpu.core_type<tc>, window_params = [{transform_indices = @transform_0, window_bounds = array<i64: 1, 8, 256>}, {pipeline_mode = #tpu.pipeline_mode<synchronous>, transform_indices = @transform_1, window_bounds = array<i64: 8, 256>}, {pipeline_mode = #tpu.pipeline_mode<synchronous>, transform_indices = @transform_2, window_bounds = array<i64: 128, 128>}, {transform_indices = @transform_3, window_bounds = array<i64: 1, 128, 128>}]} {
    %cst = arith.constant 8.000000e+00 : f32
    %cst_0 = arith.constant 5.000000e-01 : f32
    %0 = math.powf %cst, %cst_0 : f32
    %c0_i32 = arith.constant 0 : i32
    %1 = arith.cmpi eq, %arg1, %c0_i32 : i32
    %2 = arith.extui %1 : i1 to i32
    %c0_i32_1 = arith.constant 0 : i32
    %3 = arith.cmpi ne, %2, %c0_i32_1 : i32
    scf.if %3 {
      %cst_26 = arith.constant 0xFF800000 : f32
      %48 = vector.broadcast %cst_26 : f32 to vector<128x1xf32>
      %c0_27 = arith.constant 0 : index
      %c0_28 = arith.constant 0 : index
      %49 = vector.load %arg6[%c0_27, %c0_28] : memref<128x1xf32, #tpu.memory_space<vmem>>, vector<128x1xf32>
      tpu.vector_store %arg6[%c0_27, %c0_28], %48 {strides = array<i32>} : memref<128x1xf32, #tpu.memory_space<vmem>>, vector<128x1xf32>,
      %cst_29 = arith.constant 0.000000e+00 : f32
      %50 = vector.broadcast %cst_29 : f32 to vector<128x1xf32>
      %c0_30 = arith.constant 0 : index
      %c0_31 = arith.constant 0 : index
      %51 = vector.load %arg7[%c0_30, %c0_31] : memref<128x1xf32, #tpu.memory_space<vmem>>, vector<128x1xf32>
      tpu.vector_store %arg7[%c0_30, %c0_31], %50 {strides = array<i32>} : memref<128x1xf32, #tpu.memory_space<vmem>>, vector<128x1xf32>,
      %cst_32 = arith.constant 0.000000e+00 : f32
      %52 = vector.broadcast %cst_32 : f32 to vector<128x128xf32>
      %c0_33 = arith.constant 0 : index
      %c0_34 = arith.constant 0 : index
      %53 = vector.load %arg8[%c0_33, %c0_34] : memref<128x128xf32, #tpu.memory_space<vmem>>, vector<128x128xf32>
      tpu.vector_store %arg8[%c0_33, %c0_34], %52 {strides = array<i32>} : memref<128x128xf32, #tpu.memory_space<vmem>>, vector<128x128xf32>,
    } else {
    }
    %c0 = arith.constant 0 : index
    %c0_2 = arith.constant 0 : index
    %c0_3 = arith.constant 0 : index
    %4 = vector.load %arg2[%c0, %c0_2, %c0_3] : memref<1x8x256xf32, #tpu.memory_space<vmem>>, vector<1x8x256xf32>
    %5 = vector.shape_cast %4 : vector<1x8x256xf32> to vector<8x256xf32>
    %6 = arith.mulf %5, %5 : vector<8x256xf32>
    %cst_4 = arith.constant dense<0.000000e+00> : vector<256xf32>
    %7 = vector.multi_reduction <add>, %6, %cst_4 [0] : vector<8x256xf32> to vector<256xf32>
    %8 = vector.shape_cast %7 : vector<256xf32> to vector<1x256xf32>
    %cst_5 = arith.constant 1.000000e-24 : f32
    %9 = vector.broadcast %cst_5 : f32 to vector<1x256xf32>
    %10 = arith.maximumf %8, %9 : vector<1x256xf32>
    %11 = math.rsqrt %10 : vector<1x256xf32>
    %12 = vector.broadcast %0 : f32 to vector<1x256xf32>
    %13 = arith.mulf %12, %11 : vector<1x256xf32>
    %14 = vector.broadcast %13 : vector<1x256xf32> to vector<8x256xf32>
    %15 = arith.mulf %5, %14 : vector<8x256xf32>
    %c0_6 = arith.constant 0 : index
    %c0_7 = arith.constant 0 : index
    %16 = vector.load %arg3[%c0_6, %c0_7] : memref<8x256xbf16, #tpu.memory_space<vmem>>, vector<8x256xbf16>
    %17 = arith.truncf %15 : vector<8x256xf32> to vector<8x256xbf16>
    %cst_8 = arith.constant dense<0.000000e+00> : vector<256x256xf32>
    %18 = tpu.matmul %16, %17, %cst_8 {dimension_numbers = #tpu.dot_dimension_numbers<[0], [0], [1], [1], [0, 1, 1, 1], [], []>} : vector<8x256xbf16>, vector<8x256xbf16>, vector<256x256xf32> -> vector<256x256xf32>
    %19 = vector.extract_strided_slice %18 {offsets = [0, 0], sizes = [128, 256], strides = [1, 1]} : vector<256x256xf32> to vector<128x256xf32>
    %20 = vector.extract_strided_slice %18 {offsets = [128, 0], sizes = [128, 256], strides = [1, 1]} : vector<256x256xf32> to vector<128x256xf32>
    %c0_9 = arith.constant 0 : index
    %c0_10 = arith.constant 0 : index
    %21 = vector.load %arg6[%c0_9, %c0_10] : memref<128x1xf32, #tpu.memory_space<vmem>>, vector<128x1xf32>
    %cst_11 = arith.constant dense<0xFF800000> : vector<128xf32>
    %22 = vector.multi_reduction <maximumf>, %19, %cst_11 [1] : vector<128x256xf32> to vector<128xf32>
    %23 = vector.shape_cast %22 : vector<128xf32> to vector<128x1xf32>
    %24 = arith.maximumf %21, %23 : vector<128x1xf32>
    %25 = arith.subf %21, %24 : vector<128x1xf32>
    %26 = math.exp %25 : vector<128x1xf32>
    %27 = vector.broadcast %24 : vector<128x1xf32> to vector<128x256xf32>
    %28 = arith.subf %19, %27 : vector<128x256xf32>
    %29 = math.exp %28 : vector<128x256xf32>
    %c0_12 = arith.constant 0 : index
    %c0_13 = arith.constant 0 : index
    %30 = vector.load %arg7[%c0_12, %c0_13] : memref<128x1xf32, #tpu.memory_space<vmem>>, vector<128x1xf32>
    %31 = arith.mulf %26, %30 : vector<128x1xf32>
    %cst_14 = arith.constant dense<0.000000e+00> : vector<128xf32>
    %32 = vector.multi_reduction <add>, %29, %cst_14 [1] : vector<128x256xf32> to vector<128xf32>
    %33 = vector.shape_cast %32 : vector<128xf32> to vector<128x1xf32>
    %34 = arith.addf %31, %33 : vector<128x1xf32>
    %c0_15 = arith.constant 0 : index
    %c0_16 = arith.constant 0 : index
    %35 = vector.load %arg7[%c0_15, %c0_16] : memref<128x1xf32, #tpu.memory_space<vmem>>, vector<128x1xf32>
    tpu.vector_store %arg7[%c0_15, %c0_16], %34 {strides = array<i32>} : memref<128x1xf32, #tpu.memory_space<vmem>>, vector<128x1xf32>,
    %c0_17 = arith.constant 0 : index
    %c0_18 = arith.constant 0 : index
    %36 = vector.load %arg8[%c0_17, %c0_18] : memref<128x128xf32, #tpu.memory_space<vmem>>, vector<128x128xf32>
    %37 = vector.broadcast %26 : vector<128x1xf32> to vector<128x128xf32>
    %38 = arith.mulf %37, %36 : vector<128x128xf32>
    %39 = arith.truncf %29 : vector<128x256xf32> to vector<128x256xbf16>
    %40 = arith.truncf %20 : vector<128x256xf32> to vector<128x256xbf16>
    %cst_19 = arith.constant dense<0.000000e+00> : vector<128x128xf32>
    %41 = tpu.matmul %39, %40, %cst_19 {dimension_numbers = #tpu.dot_dimension_numbers<[1], [1], [0], [0], [0, 0, 1, 0], [], []>} : vector<128x256xbf16>, vector<128x256xbf16>, vector<128x128xf32> -> vector<128x128xf32>
    %42 = arith.addf %38, %41 : vector<128x128xf32>
    %c0_20 = arith.constant 0 : index
    %c0_21 = arith.constant 0 : index
    %43 = vector.load %arg8[%c0_20, %c0_21] : memref<128x128xf32, #tpu.memory_space<vmem>>, vector<128x128xf32>
    tpu.vector_store %arg8[%c0_20, %c0_21], %42 {strides = array<i32>} : memref<128x128xf32, #tpu.memory_space<vmem>>, vector<128x128xf32>,
    %c0_22 = arith.constant 0 : index
    %c0_23 = arith.constant 0 : index
    %44 = vector.load %arg6[%c0_22, %c0_23] : memref<128x1xf32, #tpu.memory_space<vmem>>, vector<128x1xf32>
    tpu.vector_store %arg6[%c0_22, %c0_23], %24 {strides = array<i32>} : memref<128x1xf32, #tpu.memory_space<vmem>>, vector<128x1xf32>,
    %c0_i32_24 = arith.constant 0 : i32
    %45 = arith.cmpi eq, %arg1, %c0_i32_24 : i32
    %46 = arith.extui %45 : i1 to i32
    %c0_i32_25 = arith.constant 0 : i32
    %47 = arith.cmpi ne, %46, %c0_i32_25 : i32
    scf.if %47 {
      %c0_26 = arith.constant 0 : index
      %c0_27 = arith.constant 0 : index
      %48 = vector.load %arg7[%c0_26, %c0_27] : memref<128x1xf32, #tpu.memory_space<vmem>>, vector<128x1xf32>
      %49 = tpu.reciprocal %48 {approx = true} : vector<128x1xf32> -> vector<128x1xf32>
      %c0_28 = arith.constant 0 : index
      %c0_29 = arith.constant 0 : index
      %50 = vector.load %arg8[%c0_28, %c0_29] : memref<128x128xf32, #tpu.memory_space<vmem>>, vector<128x128xf32>
      %51 = vector.broadcast %49 : vector<128x1xf32> to vector<128x128xf32>
      %52 = arith.mulf %50, %51 : vector<128x128xf32>
      %c0_30 = arith.constant 0 : index
      %c0_31 = arith.constant 0 : index
      %53 = vector.load %arg4[%c0_30, %c0_31] : memref<128x128xf32, #tpu.memory_space<vmem>>, vector<128x128xf32>
      %54 = arith.mulf %52, %53 : vector<128x128xf32>
      %c0_32 = arith.constant 0 : index
      %c0_33 = arith.constant 0 : index
      %c0_34 = arith.constant 0 : index
      %55 = vector.load %arg5[%c0_32, %c0_33, %c0_34] : memref<1x128x128xf32, #tpu.memory_space<vmem>>, vector<1x128x128xf32>
      %56 = vector.shape_cast %55 : vector<1x128x128xf32> to vector<128x128xf32>
      %57 = vector.shape_cast %54 : vector<128x128xf32> to vector<1x128x128xf32>
      tpu.vector_store %arg5[%c0_32, %c0_33, %c0_34], %57 {strides = array<i32>} : memref<1x128x128xf32, #tpu.memory_space<vmem>>, vector<1x128x128xf32>,
    } else {
    }
    return
  }
  func.func @transform_0(%arg0: i32, %arg1: i32) -> (i32, i32, i32) {
    %c0_i32 = arith.constant 0 : i32
    %c0_i32_0 = arith.constant 0 : i32
    return %arg0, %c0_i32, %arg1 : i32, i32, i32
  }
  func.func @transform_1(%arg0: i32, %arg1: i32) -> (i32, i32) {
    %c0_i32 = arith.constant 0 : i32
    %c0_i32_0 = arith.constant 0 : i32
    %c0_i32_1 = arith.constant 0 : i32
    return %c0_i32, %c0_i32_0 : i32, i32
  }
  func.func @transform_2(%arg0: i32, %arg1: i32) -> (i32, i32) {
    %c0_i32 = arith.constant 0 : i32
    %c0_i32_0 = arith.constant 0 : i32
    %c0_i32_1 = arith.constant 0 : i32
    return %c0_i32, %c0_i32_0 : i32, i32
  }
  func.func @transform_3(%arg0: i32, %arg1: i32) -> (i32, i32, i32) {
    %c0_i32 = arith.constant 0 : i32
    %c0_i32_0 = arith.constant 0 : i32
    %c0_i32_1 = arith.constant 0 : i32
    return %arg0, %c0_i32, %c0_i32_0 : i32, i32, i32
  }
}

</mosaic_0001>

<bundles_post_ra>
// kernel: tpu_custom_call.1
= control target key start
LH: loop header
LB: loop body
LE: loop exit
PB: predicated region body
PF: predicated region fallthrough
CT: control target
= control target key end

     0   :  { %8 = vsyncpa [#allocation6], 0  ;;  %s2884_s0 = inlined_call_operand.hbm [shape: f32[2,8,256], index: 0, kind: input, shape index: {}]   ;;  %s2885_s1 = inlined_call_operand.hbm [shape: bf16[8,256], index: 1, kind: input, shape index: {}]   ;;  %s2886_s2 = inlined_call_operand.hbm [shape: f32[128,128], index: 2, kind: input, shape index: {}]   ;;  %s2887_s3 = inlined_call_operand.hbm [shape: f32[2,128,128], index: 3, kind: output, shape index: {}]  }
   0x1   :  { %10 = vsyncpa [#allocation6 + $0x1], 0 }
   0x2   :  { %11 = vsyncpa [#allocation9], 0 }
   0x3   :  { %12 = vsyncpa [#allocation7], 0 }
   0x4   :  { %14 = vsyncpa [#allocation7 + $0x1], 0  ;;  %s2107_s12 = smov 0   ;;  %s2109_s13 = smov 0  }
   0x5   :  { %s2111_s14 = smov 0   ;;  %s2113_s15 = smov 0  }
   0x6   :  { %s2115_s16 = smov 0   ;;  %s2117_s17 = smov 0  }
   0x7 LB: > { %s1622_s18 = sadd.s32 4294967295, %s2076_s17   ;;  %s1623_s19 = sadd.s32 4294967294, %s2076_s17   ;;  %s2076_s17 = sphi %s2117_s17, %s20_s17   ;;  %s2072_s16 = sphi %s2115_s16, %s2982_s16   ;;  %s2068_s15 = sphi %s2113_s15, %s2981_s15   ;;  %s2064_s14 = sphi %s2111_s14, %s2980_s14   ;;  %s2060_s13 = sphi %s2109_s13, %s2979_s13   ;;  %s2056_s12 = sphi %s2107_s12, %s2978_s12  }
   0x8   : > { %p54_p0 = scmp.ne.s32.totalorder %s2060_s13, %s2056_s12  ;;  %p2143_p1 = scmp.eq.s32.totalorder %s1622_s18, 0 }
   0x9   : > { %p126_p2 = scmp.eq.s32.totalorder %s1623_s19, 1  ;;  %p1624_p4 = scmp.ge.s32.totalorder %s2076_s17, 1 }
   0xa   : > { %p2149_p3 = por %p2143_p1, %p54_p0  ;;  %p133_p6 = scmp.lt.s32.totalorder %s2076_s17, 3 }
   0xb   : > { %p2154_p5 = por %p126_p2, %p54_p0  ;;  %s145_s25 = sshll.u32 %s2885_s1, 4  ;;  %s146_s25 = int_to_ptr.hbm [resolvable:$true] %s145_s25 }
   0xc   : > { %p2162_p7 = pnand %p1624_p4, %p133_p6  ;;  %p1627_p8 = scmp.ge.s32.totalorder %s2076_s17, 2 }
   0xd   : > { %s2078_s27 = smov [#allocation8]   ;;  %s156_s4 = sshll.u32 %s2886_s2, 4  ;;  %s157_s4 = int_to_ptr.hbm [resolvable:$true] %s156_s4 }
   0xe   : > { %p1687_p9 = pneg %p2162_p7  ;;  %s147_s28 = sshll.u32 %s2078_s27, 4  ;;  %s148_s28 = int_to_ptr.vmem [resolvable:$true] %s147_s28 }
   0xf   : > { %s2079_s5 = smov [#allocation10]   ;;  %s2080_s7 = smov 128  }
  0x10   : > { %p1688_p10 = pnand %p1687_p9, %p2143_p1  ;;  %s158_s6 = sshll.u32 %s2079_s5, 4  ;;  %s159_s6 = int_to_ptr.vmem [resolvable:$true] %s158_s6 }
  0x11   : > { %s2081_s8 = smov 8   ;;  %p120_p11 = scmp.eq.s32.totalorder %s1622_s18, 1 }
  0x12   : > { %1690 = dma.hbm_to_vmem [thread:$0]  (!%p1688_p10), %s146_s25, 128, %s148_s28, [#allocation9]  }
  0x13   : > { %1693 = dma.hbm_to_vmem [thread:$0]  (!%p1688_p10), %s157_s4, 2048, %s159_s6, [#allocation9], %s2080_s7, %s2080_s7, %s2081_s8  }
  0x14   : > { %s32_s9 = sadd.s32 1, %s2072_s16  ;;  %s41_s10 = sadd.s32 1, %s2064_s14 }
  0x15   : > { %p34_p12 = scmp.ge.s32.totalorder %s32_s9, 2  ;;  %p48_p13 = scmp.ne.s32.totalorder %s2064_s14, %s2060_s13 }
  0x16   : > { %p49_p0 = scmp.eq.s32.totalorder %s2076_s17, 0  ;;  %p1704_p4 = scmp.lt.s32.totalorder %s2076_s17, 2 }
  0x17   : > { %s2984_s9 = smov (%p34_p12, %s32_s9), 0  ;;  %p2183_p2 = por %p120_p11, %p48_p13 }
  0x18   : > { %s36_s19 = ssub.s32 %s2072_s16, %s2984_s9  ;;  %s172_s23 = sand.u32 1, %s2064_s14  }
  0x19   : > { %p39_p6 = scmp.eq.s32.totalorder %s36_s19, 0  ;;  %p50_p9 = por %p49_p0, %p48_p13 }
  0x1a   : > { %s1628_s24 = sshll.u32 %s172_s23, 4  ;;  %s1673_s18 = sshll.u32 %s2072_s16, 4 }
  0x1b   : > { %s2193_s25 = scalar_select %p39_p6, %s2064_s14, %s41_s10  }
  0x1c   : > { %s183_s29 = scalar_lea.hbm %s2884_s0, %s1673_s18  ;;  %s176_s4 = scalar_lea.vmem [#allocation5], %s1628_s24 }
  0x1d   : > { %s185_s30 = sshll.u32 %s183_s29, 4  ;;  %s187_s5 = sshll.u32 %s176_s4, 4  ;;  %s186_s30 = int_to_ptr.hbm [resolvable:$true] %s185_s30  ;;  %s188_s5 = int_to_ptr.vmem [resolvable:$true] %s187_s5 }
  0x1e   : > { %p1695_p10 = pnand %p1704_p4, %p50_p9  ;;  %s173_s6 = scalar_lea.sflag [#allocation6], %s172_s23 }
  0x1f   : > { %196 = sbr.rel (%p2162_p7) target bundleno = 967 (0x3c7), region = 32 }
  0x20   : > { %1697 = dma.hbm_to_vmem [thread:$0]  (!%p1695_p10), %s186_s30, 256, %s188_s5, %s173_s6  }
  0x24   : > { %s2203_s7 = sand.u32 1, %s2060_s13  }
  0x25   : > { %s1632_s8 = sshll.u32 %s2203_s7, 4  ;;  %s199_s10 = scalar_lea.sflag [#allocation6], %s2203_s7 }
  0x26   : > { %s202_s19 = scalar_lea.vmem [#allocation5], %s1632_s8 }
  0x27   : > { %2043 = dma.done.wait (%p2149_p3), %s199_s10, 256  }
  0x28   : > { %2045 = vsyncadd (%p2149_p3), %s199_s10, 4294967040 }
  0x29   : > { %2047 = dma.done.wait (%p2143_p1), [#allocation9], 2176  }
  0x2a   : > { %2049 = vsyncadd (%p2143_p1), [#allocation9], 4294965120  ;;  %v333_v0 = vld [vmem:[#allocation8] sm:$0xff]  ;;  %v292_v11 = vld [vmem:[%s202_s19 + $0x8] sm:$0xff]  ;;  %vm416_vm3 = vcmask 1043456   ;;  %vm367_vm7 = vcmask 64512  }
  0x2b   : > { %v291_v1 = vld [vmem:[%s202_s19] sm:$0xff]  ;;  %v337_v2 = vunpack.c.l.b16 %v333_v0  ;;  %v338_v3 = vunpack.c.h.b16 %v333_v0  ;;  %v294_v13 = vmul.f32 %v292_v11, %v292_v11  ;;  %vm242_vm8 = vcmask 7168   ;;  %s1635_s20 = sshll.u32 %s2203_s7, 7  ;;  %s1674_s26 = sshll.u32 %s2068_s15, 7 }
  0x2c   : > { %v293_v4 = vmul.f32 %v291_v1, %v291_v1  ;;  %s2792_s21 = scalar_lea.vmem [#allocation11], %s1635_s20  ;;  %s1515_s18 = scalar_lea.hbm %s2887_s3, %s1674_s26 }
  0x2d   : > { %v339_v5 = vpack.c.b16 %v337_v2, %v337_v2  ;;  %v340_v6 = vpack.c.b16 %v338_v3, %v338_v3  ;;  %v301_v15 = vrot.slane %v294_v13, 4  ;;  %s1516_s27 = sshll.u32 %s2792_s21, 4  ;;  %s1518_s28 = sshll.u32 %s1515_s18, 4  ;;  %s1517_s27 = int_to_ptr.vmem [resolvable:$true] %s1516_s27  ;;  %s1519_s28 = int_to_ptr.hbm [resolvable:$true] %s1518_s28 }
  0x2e   : > { %v295_v7 = vrot.slane %v293_v4, 4  ;;  %s1504_s29 = scalar_lea.sflag [#allocation7], %s2203_s7  ;;  %s2004_s15 = sshra.s32 %s1519_s28, 4  ;;  %s2005_s15 = int_to_ptr.hbm [resolvable:$true] %s2004_s15 }
  0x2f   : > { %343 = vxpose.binary.xlu0.c.b16.start.end [1/2] (short) %v340_v6, %v339_v5, 128  ;;  %v302_v17 = vadd.f32 %v301_v15, %v294_v13  ;;  %s2006_s30 = scalar_lea.hbm %s2005_s15, 128  ;;  %s2010_s6 = scalar_lea.hbm %s2887_s3, 256 }
  0x30   : > { %v296_v8 = vadd.f32 %v295_v7, %v293_v4  ;;  %p2007_p1 = scmp.ne.s32.totalorder %s2005_s15, %s2006_s30  ;;  %p2011_p11 = scmp.lt.s32.totalorder %s2005_s15, %s2887_s3 }
  0x31   : > { %v303_v18 = vrot.slane %v302_v17, 2  ;;  %p2012_p12 = scmp.lt.s32.totalorder %s2010_s6, %s2006_s30 }
  0x32   : > { %v297_v9 = vrot.slane %v296_v8, 2  ;;  %p2008_p3 = pnand %p2007_p1, %p2183_p2 }
  0x33   : > { %v304_v19 = vadd.f32 %v303_v18, %v302_v17  ;;  %p2013_p13 = por %p2012_p12, %p2011_p11 }
  0x34   : > { %v298_v10 = vadd.f32 %v297_v9, %v296_v8  ;;  %p2009_p7 = pneg %p2008_p3 }
  0x35   : > { %v305_v20 = vrot.slane %v304_v19, 1 }
  0x36   : > { %v299_v12 = vrot.slane %v298_v10, 1  ;;  %p2014_p0 = pnand %p2013_p13, %p2009_p7 }
  0x37   : > { %v306_v22 = vadd.f32 %v305_v20, %v304_v19 }
  0x38   : > { %v300_v14 = vadd.f32 %v299_v12, %v298_v10 }
  0x39   : > { %v308_v24 = vmax.f32 %v306_v22, 1e-24 }
  0x3a   : > { %v307_v16 = vmax.f32 %v300_v14, 1e-24 }
  0x3b   : > { %vm325_vm4 = vweird.f32 %v308_v24 }
  0x3c   : > { %1768 = vrsqrt.f32 %v307_v16  ;;  %vm315_vm0 = vweird.f32 %v307_v16 }
  0x3d   : > { %1770 = vrsqrt.f32 %v308_v24 }
  0x42   : > { %v1769_v21 = vpop.eup %1768 }
  0x43   : > { %v310_v23 = vmul.f32 %v1769_v21, %v307_v16  ;;  %vm316_vm1 = vweird.f32 %v1769_v21  ;;  %v1771_v29 = vpop.eup %1770 }
  0x44   : > { %vm317_vm2 = vmor %vm315_vm0, %vm316_vm1  ;;  %v320_v31 = vmul.f32 %v1771_v29, %v308_v24  ;;  %vm326_vm5 = vweird.f32 %v1771_v29 }
  0x45   : > { %v311_v25 = vmul.f32 %v1769_v21, %v310_v23  ;;  %vm327_vm6 = vmor %vm325_vm4, %vm326_vm5 }
  0x46   : > { %v321_v33 = vmul.f32 %v1771_v29, %v320_v31 }
  0x47   : > { %v312_v26 = vmul.f32 0.5, %v311_v25 }
  0x48   : > { %v322_v35 = vmul.f32 0.5, %v321_v33 }
  0x49   : > { %v313_v27 = vsub.f32 1.5, %v312_v26 }
  0x4a   : > { %v323_v37 = vsub.f32 1.5, %v322_v35  ;;  %v2083_v35 = vmov 0.0  }
  0x4b   : > { %v314_v28 = vmul.f32 %v1769_v21, %v313_v27  ;;  %259 = vst.msk [vmem:[#allocation3] sm:$0xff] %vm242_vm8, %v2083_v35 }
  0x4c   : > { %v324_v39 = vmul.f32 %v1771_v29, %v323_v37  ;;  %260 = vst.msk [vmem:[#allocation3 + $0x8] sm:$0xff] %vm242_vm8, %v2083_v35 }
  0x4d   : > { %v318_v30 = vsel %vm317_vm2, %v1769_v21, %v314_v28  ;;  %v2082_v28 = vmov -inf   ;;  %261 = vst.msk [vmem:[#allocation3 + $0x10] sm:$0xff] %vm242_vm8, %v2083_v35 }
  0x4e   : > { %v329_v32 = vmul.f32 2.828427, %v318_v30  ;;  %v328_v40 = vsel %vm327_vm6, %v1771_v29, %v324_v39  ;;  %243 = vst.msk [vmem:[#allocation2] sm:$0xff] %vm242_vm8, %v2082_v28 }
  0x4f   : > { %v330_v41 = vmul.f32 2.828427, %v328_v40  ;;  %244 = vst.msk [vmem:[#allocation2 + $0x8] sm:$0xff] %vm242_vm8, %v2082_v28  ;;  %v2084_v40 = vmov 0  }
  0x50   : > { %v331_v34 = vmul.f32 %v329_v32, %v291_v1  ;;  %245 = vst.msk [vmem:[#allocation2 + $0x10] sm:$0xff] %vm242_vm8, %v2082_v28  ;;  %1765 = vset.pattern.permute.xlu2 %v2084_v40  ;;  %1766 = vset.pattern.permute.xlu1 %v2084_v40 }
  0x51   : > { %v332_v42 = vmul.f32 %v330_v41, %v292_v11  ;;  %246 = vst.msk [vmem:[#allocation2 + $0x18] sm:$0xff] %vm242_vm8, %v2082_v28 }
  0x52   : > { %v334_v36 = vpack.c.bf16 %v331_v34, %v331_v34  ;;  %247 = vst.msk [vmem:[#allocation2 + $0x20] sm:$0xff] %vm242_vm8, %v2082_v28 }
  0x53   : > { %v335_v43 = vpack.c.bf16 %v332_v42, %v332_v42  ;;  %248 = vst.msk [vmem:[#allocation2 + $0x28] sm:$0xff] %vm242_vm8, %v2082_v28 }
  0x54   : > { %v418_v38 = vsel %vm416_vm3, %v334_v36, 0  ;;  %249 = vst.msk [vmem:[#allocation2 + $0x30] sm:$0xff] %vm242_vm8, %v2082_v28 }
  0x55   : > { %430 = vmatpush.bf16.msra.mxu0 %v418_v38  ;;  %v421_v44 = vsel %vm416_vm3, %v335_v43, 0  ;;  %250 = vst.msk [vmem:[#allocation2 + $0x38] sm:$0xff] %vm242_vm8, %v2082_v28 }
  0x56   : > { %519 = vmatpush.bf16.msra.mxu1 %v421_v44  ;;  %251 = vst.msk [vmem:[#allocation2 + $0x40] sm:$0xff] %vm242_vm8, %v2082_v28 }
  0x57   : > { %252 = vst.msk [vmem:[#allocation2 + $0x48] sm:$0xff] %vm242_vm8, %v2082_v28 }
  0x58   : > { %253 = vst.msk [vmem:[#allocation2 + $0x50] sm:$0xff] %vm242_vm8, %v2082_v28 }
  0x59   : > { %254 = vst.msk [vmem:[#allocation2 + $0x58] sm:$0xff] %vm242_vm8, %v2082_v28 }
  0x5a   : > { %255 = vst.msk [vmem:[#allocation2 + $0x60] sm:$0xff] %vm242_vm8, %v2082_v28 }
  0x5b   : > { %256 = vst.msk [vmem:[#allocation2 + $0x68] sm:$0xff] %vm242_vm8, %v2082_v28 }
  0x5c   : > { %257 = vst.msk [vmem:[#allocation2 + $0x70] sm:$0xff] %vm242_vm8, %v2082_v28 }
  0x5d   : > { %258 = vst.msk [vmem:[#allocation2 + $0x78] sm:$0xff] %vm242_vm8, %v2082_v28 }
  0x5e   : > { %262 = vst.msk [vmem:[#allocation3 + $0x18] sm:$0xff] %vm242_vm8, %v2083_v35 }
  0x5f   : > { %263 = vst.msk [vmem:[#allocation3 + $0x20] sm:$0xff] %vm242_vm8, %v2083_v35 }
  0x60   : > { %264 = vst.msk [vmem:[#allocation3 + $0x28] sm:$0xff] %vm242_vm8, %v2083_v35 }
  0x61   : > { %265 = vst.msk [vmem:[#allocation3 + $0x30] sm:$0xff] %vm242_vm8, %v2083_v35 }
  0x62   : > { %266 = vst.msk [vmem:[#allocation3 + $0x38] sm:$0xff] %vm242_vm8, %v2083_v35 }
  0x63   : > { %267 = vst.msk [vmem:[#allocation3 + $0x40] sm:$0xff] %vm242_vm8, %v2083_v35 }
  0x64   : > { %268 = vst.msk [vmem:[#allocation3 + $0x48] sm:$0xff] %vm242_vm8, %v2083_v35 }
  0x65   : > { %269 = vst.msk [vmem:[#allocation3 + $0x50] sm:$0xff] %vm242_vm8, %v2083_v35 }
  0x66   : > { %270 = vst.msk [vmem:[#allocation3 + $0x58] sm:$0xff] %vm242_vm8, %v2083_v35 }
  0x67   : > { %271 = vst.msk [vmem:[#allocation3 + $0x60] sm:$0xff] %vm242_vm8, %v2083_v35 }
  0x68   : > { %272 = vst.msk [vmem:[#allocation3 + $0x68] sm:$0xff] %vm242_vm8, %v2083_v35 }
  0x69   : > { %273 = vst.msk [vmem:[#allocation3 + $0x70] sm:$0xff] %vm242_vm8, %v2083_v35 }
  0x6a   : > { %274 = vst.msk [vmem:[#allocation3 + $0x78] sm:$0xff] %vm242_vm8, %v2083_v35 }
  0x96   : > { %1767 = vset.pattern.permute.xlu0 %v2084_v40 }
  0xdb   : > { %v351_v45 = vpop.trf.xlu0 }
  0xdc   : > { %1636 = vmatmul.msk.bf16.vlgmr.msra.gmra.mxu0 %vm367_vm7, %v351_v45  ;;  %1652 = vmatmul.msk.bf16.vlgmr.msra.gmra.mxu1 %vm367_vm7, %v351_v45  ;;  %v601_v45 = vld [vmem:[#allocation2] sm:$0xff] }
  0xe3   : > { %v352_v46 = vpop.trf.xlu0 }
  0xeb   : > { %v353_v47 = vpop.trf.xlu0 }
  0xec   : > { %1637 = vmatmul.msk.bf16.gmra.mxu0 %vm367_vm7, %v353_v47  ;;  %1653 = vmatmul.msk.bf16.gmra.mxu1 %vm367_vm7, %v353_v47 }
  0xf3   : > { %v354_v48 = vpop.trf.xlu0 }
  0xfb   : > { %v355_v49 = vpop.trf.xlu0 }
  0xfc   : > { %1638 = vmatmul.msk.bf16.gmra.mxu0 %vm367_vm7, %v355_v49  ;;  %1654 = vmatmul.msk.bf16.gmra.mxu1 %vm367_vm7, %v355_v49 }
 0x103   : > { %v356_v50 = vpop.trf.xlu0 }
 0x10b   : > { %v357_v51 = vpop.trf.xlu0 }
 0x10c   : > { %1639 = vmatmul.msk.bf16.gmra.mxu0 %vm367_vm7, %v357_v51  ;;  %1655 = vmatmul.msk.bf16.gmra.mxu1 %vm367_vm7, %v357_v51  ;;  %v602_v51 = vld [vmem:[#allocation2 + $0x8] sm:$0xff] }
 0x113   : > { %v358_v52 = vpop.trf.xlu0 }
 0x11b   : > { %v359_v53 = vpop.trf.xlu0 }
 0x11c   : > { %1640 = vmatmul.msk.bf16.gmra.mxu0 %vm367_vm7, %v359_v53  ;;  %1656 = vmatmul.msk.bf16.gmra.mxu1 %vm367_vm7, %v359_v53 }
 0x123   : > { %v360_v54 = vpop.trf.xlu0 }
 0x12b   : > { %v361_v55 = vpop.trf.xlu0 }
 0x12c   : > { %1641 = vmatmul.msk.bf16.gmra.mxu0 %vm367_vm7, %v361_v55  ;;  %1657 = vmatmul.msk.bf16.gmra.mxu1 %vm367_vm7, %v361_v55 }
 0x133   : > { %v2227_v56 = vpop.trf.xlu0 }
 0x13b   : > { %v363_v57 = vpop.trf.xlu0 }
 0x13c   : > { %1642 = vmatmul.msk.bf16.gmra.mxu0 %vm367_vm7, %v363_v57  ;;  %1658 = vmatmul.msk.bf16.gmra.mxu1 %vm367_vm7, %v363_v57 }
 0x143   : > { %v2231_v58 = vpop.trf.xlu0 }
 0x14b   : > { %v365_v59 = vpop.trf.xlu0 }
 0x14c   : > { %1643 = vmatmul.msk.bf16.gmra.mxu0 %vm367_vm7, %v365_v59  ;;  %1659 = vmatmul.msk.bf16.gmra.mxu1 %vm367_vm7, %v365_v59 }
 0x153   : > { %v366_v41 = vpop.trf.xlu0 }
 0x159   : > { %v2235_v60 = vpop.f32.mrf.mxu0  ;;  %v2237_v61 = vpop.f32.mrf.mxu1 }
 0x15a   : > { %v617_v62 = vmax.f32 %v2235_v60, %v2237_v61 }
 0x15c   : > { %1644 = vmatmul.msk.bf16.gmra.mxu0 %vm367_vm7, %v352_v46  ;;  %1660 = vmatmul.msk.bf16.gmra.mxu1 %vm367_vm7, %v352_v46 }
 0x15d   : > { %618 = vmax.xlane.f32.xlu0 %v617_v62 }
 0x161   : > { %v2243_v63 = vpop.f32.mrf.mxu0  ;;  %v2245_v0 = vpop.f32.mrf.mxu1 }
 0x162   : > { %v620_v1 = vmax.f32 %v2243_v63, %v2245_v0 }
 0x164   : > { %621 = vmax.xlane.f32.xlu1 %v620_v1 }
 0x169   : > { %v2249_v2 = vpop.f32.mrf.mxu0  ;;  %v2251_v3 = vpop.f32.mrf.mxu1 }
 0x16a   : > { %v623_v4 = vmax.f32 %v2249_v2, %v2251_v3 }
 0x16c   : > { %1645 = vmatmul.msk.bf16.gmra.mxu0 %vm367_vm7, %v354_v48  ;;  %1661 = vmatmul.msk.bf16.gmra.mxu1 %vm367_vm7, %v354_v48 }
 0x16d   : > { %624 = vmax.xlane.f32.xlu1 %v623_v4 }
 0x171   : > { %v2257_v5 = vpop.f32.mrf.mxu0  ;;  %v2259_v6 = vpop.f32.mrf.mxu1 }
 0x172   : > { %v626_v7 = vmax.f32 %v2257_v5, %v2259_v6 }
 0x174   : > { %627 = vmax.xlane.f32.xlu2 %v626_v7 }
 0x179   : > { %v2263_v8 = vpop.f32.mrf.mxu0  ;;  %v2265_v9 = vpop.f32.mrf.mxu1 }
 0x17a   : > { %v629_v10 = vmax.f32 %v2263_v8, %v2265_v9 }
 0x17c   : > { %1646 = vmatmul.msk.bf16.gmra.mxu0 %vm367_vm7, %v356_v50  ;;  %1662 = vmatmul.msk.bf16.gmra.mxu1 %vm367_vm7, %v356_v50 }
 0x17d   : > { %630 = vmax.xlane.f32.xlu2 %v629_v10 }
 0x181   : > { %v2271_v11 = vpop.f32.mrf.mxu0  ;;  %v2273_v12 = vpop.f32.mrf.mxu1 }
 0x182   : > { %v632_v13 = vmax.f32 %v2271_v11, %v2273_v12 }
 0x184   : > { %633 = vmax.xlane.f32.xlu1 %v632_v13  ;;  %v604_v13 = vld [vmem:[#allocation2 + $0x18] sm:$0xff] }
 0x189   : > { %v2277_v14 = vpop.f32.mrf.mxu0  ;;  %v2279_v15 = vpop.f32.mrf.mxu1 }
 0x18a   : > { %v635_v16 = vmax.f32 %v2277_v14, %v2279_v15 }
 0x18c   : > { %1647 = vmatmul.msk.bf16.gmra.mxu0 %vm367_vm7, %v358_v52  ;;  %1663 = vmatmul.msk.bf16.gmra.mxu1 %vm367_vm7, %v358_v52 }
 0x18d   : > { %636 = vmax.xlane.f32.xlu2 %v635_v16 }
 0x191   : > { %v2285_v17 = vpop.f32.mrf.mxu0  ;;  %v2287_v18 = vpop.f32.mrf.mxu1 }
 0x192   : > { %v638_v19 = vmax.f32 %v2285_v17, %v2287_v18 }
 0x194   : > { %639 = vmax.xlane.f32.xlu1 %v638_v19 }
 0x199   : > { %v2291_v20 = vpop.f32.mrf.mxu0  ;;  %v2293_v21 = vpop.f32.mrf.mxu1 }
 0x19a   : > { %v641_v22 = vmax.f32 %v2291_v20, %v2293_v21 }
 0x19c   : > { %1648 = vmatmul.msk.bf16.gmra.mxu0 %vm367_vm7, %v360_v54  ;;  %1664 = vmatmul.msk.bf16.gmra.mxu1 %vm367_vm7, %v360_v54 }
 0x19d   : > { %642 = vmax.xlane.f32.xlu2 %v641_v22 }
 0x1a1   : > { %v2299_v23 = vpop.f32.mrf.mxu0  ;;  %v2301_v24 = vpop.f32.mrf.mxu1 }
 0x1a2   : > { %v644_v25 = vmax.f32 %v2299_v23, %v2301_v24 }
 0x1a4   : > { %645 = vmax.xlane.f32.xlu1 %v644_v25 }
 0x1a9   : > { %v2305_v26 = vpop.f32.mrf.mxu0  ;;  %v2307_v27 = vpop.f32.mrf.mxu1 }
 0x1aa   : > { %2918 = vst [vmem:[#allocation15_spill] sm:$0xff] %v2305_v26  ;;  %v647_v29 = vmax.f32 %v2305_v26, %v2307_v27 }
 0x1ab   : > { %2919 = vst [vmem:[#allocation16_spill] sm:$0xff] %v2307_v27  ;;  %v616_v27 = vld [vmem:[#allocation2 + $0x78] sm:$0xff] }
 0x1ac   : > { %1649 = vmatmul.msk.bf16.gmra.mxu0 %vm367_vm7, %v2227_v56  ;;  %1665 = vmatmul.msk.bf16.gmra.mxu1 %vm367_vm7, %v2227_v56  ;;  %v603_v56 = vld [vmem:[#allocation2 + $0x10] sm:$0xff] }
 0x1ad   : > { %648 = vmax.xlane.f32.xlu2 %v647_v29 }
 0x1b1   : > { %v2323_v30 = vpop.f32.mrf.mxu0  ;;  %v2325_v31 = vpop.f32.mrf.mxu1 }
 0x1b2   : > { %2920 = vst [vmem:[#allocation17_spill] sm:$0xff] %v2323_v30  ;;  %v650_v32 = vmax.f32 %v2323_v30, %v2325_v31 }
 0x1b3   : > { %2921 = vst [vmem:[#allocation18_spill] sm:$0xff] %v2325_v31 }
 0x1b4   : > { %651 = vmax.xlane.f32.xlu1 %v650_v32  ;;  %v605_v32 = vld [vmem:[#allocation2 + $0x20] sm:$0xff] }
 0x1b9   : > { %v2337_v33 = vpop.f32.mrf.mxu0  ;;  %v2339_v34 = vpop.f32.mrf.mxu1 }
 0x1ba   : > { %2922 = vst [vmem:[#allocation19_spill] sm:$0xff] %v2337_v33  ;;  %v653_v36 = vmax.f32 %v2337_v33, %v2339_v34 }
 0x1bb   : > { %2923 = vst [vmem:[#allocation20_spill] sm:$0xff] %v2339_v34 }
 0x1bc   : > { %1650 = vmatmul.msk.bf16.gmra.mxu0 %vm367_vm7, %v2231_v58  ;;  %1666 = vmatmul.msk.bf16.gmra.mxu1 %vm367_vm7, %v2231_v58 }
 0x1bd   : > { %654 = vmax.xlane.f32.xlu2 %v653_v36 }
 0x1c1   : > { %v2355_v37 = vpop.f32.mrf.mxu0  ;;  %v2357_v38 = vpop.f32.mrf.mxu1 }
 0x1c2   : > { %2924 = vst [vmem:[#allocation21_spill] sm:$0xff] %v2355_v37  ;;  %v656_v39 = vmax.f32 %v2355_v37, %v2357_v38 }
 0x1c3   : > { %2925 = vst [vmem:[#allocation22_spill] sm:$0xff] %v2357_v38 }
 0x1c4   : > { %657 = vmax.xlane.f32.xlu1 %v656_v39 }
 0x1c9   : > { %v2369_v42 = vpop.f32.mrf.mxu0  ;;  %v2371_v43 = vpop.f32.mrf.mxu1 }
 0x1ca   : > { %2926 = vst [vmem:[#allocation23_spill] sm:$0xff] %v2369_v42  ;;  %v659_v44 = vmax.f32 %v2369_v42, %v2371_v43 }
 0x1cb   : > { %2927 = vst [vmem:[#allocation24_spill] sm:$0xff] %v2371_v43 }
 0x1cc   : > { %1651 = vmatmul.msk.bf16.gmra.mxu0 %vm367_vm7, %v366_v41  ;;  %1667 = vmatmul.msk.bf16.gmra.mxu1 %vm367_vm7, %v366_v41 }
 0x1cd   : > { %660 = vmax.xlane.f32.xlu2 %v659_v44 }
 0x1d0   : > { %v619_v46 = vpop.xlane.xlu0 %618 }
 0x1d1   : > { %v665_v47 = vmax.f32 %v601_v45, %v619_v46  ;;  %v2377_v48 = vpop.f32.mrf.mxu0  ;;  %v2379_v49 = vpop.f32.mrf.mxu1 }
 0x1d2   : > { %2928 = vst [vmem:[#allocation25_spill] sm:$0xff] %v2377_v48  ;;  %v662_v50 = vmax.f32 %v2377_v48, %v2379_v49 }
 0x1d3   : > { %2929 = vst [vmem:[#allocation26_spill] sm:$0xff] %v2379_v49 }
 0x1d4   : > { %1292 = vst.msk [vmem:[#allocation2] sm:$0xff] %vm242_vm8, %v665_v47  ;;  %663 = vmax.xlane.f32.xlu1 %v662_v50  ;;  %v606_v50 = vld [vmem:[#allocation2 + $0x28] sm:$0xff] }
 0x1d7   : > { %v622_v52 = vpop.xlane.xlu1 %621 }
 0x1d8   : > { %v666_v53 = vmax.f32 %v602_v51, %v622_v52 }
 0x1d9   : > { %v2384_v54 = vpop.f32.mrf.mxu0  ;;  %v2386_v55 = vpop.f32.mrf.mxu1 }
 0x1da   : > { %2930 = vst [vmem:[#allocation27_spill] sm:$0xff] %v2386_v55  ;;  %v682_v29 = vsub.f32 %v602_v51, %v666_v53  ;;  %v681_v51 = vsub.f32 %v601_v45, %v665_v47 }
 0x1db   : > { %1293 = vst.msk [vmem:[#allocation2 + $0x8] sm:$0xff] %vm242_vm8, %v666_v53 }
 0x1dc   : > { %v699_v41 = vmul.f32 1.442695, %v682_v29 }
 0x1e0   : > { %v625_v57 = vpop.xlane.xlu1 %624 }
 0x1e1   : > { %v667_v58 = vmax.f32 %v603_v56, %v625_v57  ;;  %v2389_v59 = vpop.f32.mrf.mxu0  ;;  %v2391_v62 = vpop.f32.mrf.mxu1 }
 0x1e3   : > { %v683_v7 = vsub.f32 %v603_v56, %v667_v58  ;;  %1294 = vst.msk [vmem:[#allocation2 + $0x10] sm:$0xff] %vm242_vm8, %v667_v58 }
 0x1e5   : > { %v701_v10 = vmul.f32 1.442695, %v683_v7  ;;  %731 = vperm.xlu2 %1765, %v665_v47  }
 0x1e7   : > { %1772 = vpow2.f32 %v701_v10  ;;  %v628_v16 = vpop.xlane.xlu2 %627 }
 0x1e8   : > { %v668_v19 = vmax.f32 %v604_v13, %v628_v16  ;;  %1774 = vpow2.f32 %v699_v41  ;;  %v607_v16 = vld [vmem:[#allocation2 + $0x30] sm:$0xff] }
 0x1e9   : > { %v2398_v22 = vpop.f32.mrf.mxu0  ;;  %v2400_v25 = vpop.f32.mrf.mxu1 }
 0x1ea   : > { %1295 = vst.msk [vmem:[#allocation2 + $0x18] sm:$0xff] %vm242_vm8, %v668_v19 }
 0x1ed   : > { %v2403_v28 = vpop.eup %1772  ;;  %741 = vperm.xlu2 %1765, %v667_v58   ;;  %736 = vperm.xlu1 %1766, %v666_v53   ;;  %v697_v58 = vmul.f32 1.442695, %v681_v51  ;;  %v609_v51 = vld [vmem:[#allocation2 + $0x40] sm:$0xff] }
 0x1ee   : > { %2931 = vst [vmem:[#allocation28_spill] sm:$0xff] %v2403_v28  ;;  %1046 = vperm.xlu0 %1767, %v2403_v28   ;;  %v2420_v7 = vpop.eup %1774 }
 0x1ef   : > { %2932 = vst [vmem:[#allocation29_spill] sm:$0xff] %v2420_v7  ;;  %1776 = vpow2.f32 %v697_v58 }
 0x1f0   : > { %v631_v35 = vpop.xlane.xlu2 %630 }
 0x1f1   : > { %v669_v36 = vmax.f32 %v605_v32, %v631_v35  ;;  %v2406_v39 = vpop.f32.mrf.mxu0  ;;  %v2408_v40 = vpop.f32.mrf.mxu1 }
 0x1f3   : > { %1296 = vst.msk [vmem:[#allocation2 + $0x20] sm:$0xff] %vm242_vm8, %v669_v36  ;;  %v685_v10 = vsub.f32 %v605_v32, %v669_v36  ;;  %v2435_v32 = vld [vmem:[#allocation2 + $0x38] sm:$0xff] }
 0x1f5   : > { %746 = vperm.xlu2 %1765, %v668_v19   ;;  %751 = vperm.xlu1 %1766, %v669_v36   ;;  %v705_v41 = vmul.f32 1.442695, %v685_v10  ;;  %v2432_v4 = vpop.eup %1776  ;;  %v684_v36 = vsub.f32 %v604_v13, %v668_v19 }
 0x1f6   : > { %2933 = vst [vmem:[#allocation30_spill] sm:$0xff] %v2432_v4 }
 0x1f7   : > { %v634_v52 = vpop.xlane.xlu1 %633  ;;  %1778 = vpow2.f32 %v705_v41  ;;  %v703_v46 = vmul.f32 1.442695, %v684_v36 }
 0x1f8   : > { %v670_v53 = vmax.f32 %v606_v50, %v634_v52 }
 0x1f9   : > { %v2415_v56 = vpop.f32.mrf.mxu0  ;;  %v2417_v57 = vpop.f32.mrf.mxu1  ;;  %1780 = vpow2.f32 %v703_v46 }
 0x1fa   : > { %1297 = vst.msk [vmem:[#allocation2 + $0x28] sm:$0xff] %vm242_vm8, %v670_v53  ;;  %v686_v46 = vsub.f32 %v606_v50, %v670_v53  ;;  %v611_v50 = vld [vmem:[#allocation2 + $0x50] sm:$0xff] }
 0x1fd   : > { %756 = vperm.xlu2 %1765, %v670_v53   ;;  %1041 = vperm.xlu1 %1766, %v2420_v7   ;;  %v2443_v44 = vpop.eup %1778 }
 0x1fe   : > { %2934 = vst [vmem:[#allocation31_spill] sm:$0xff] %v2443_v44 }
 0x200   : > { %v637_v29 = vpop.xlane.xlu2 %636 }
 0x201   : > { %v671_v45 = vmax.f32 %v607_v16, %v637_v29  ;;  %v2423_v47 = vpop.f32.mrf.mxu0  ;;  %v2425_v35 = vpop.f32.mrf.mxu1 }
 0x203   : > { %1298 = vst.msk [vmem:[#allocation2 + $0x30] sm:$0xff] %vm242_vm8, %v671_v45  ;;  %v687_v52 = vsub.f32 %v607_v16, %v671_v45  ;;  %v610_v16 = vld [vmem:[#allocation2 + $0x48] sm:$0xff] }
 0x205   : > { %1036 = vperm.xlu2 %1765, %v2432_v4   ;;  %761 = vperm.xlu1 %1766, %v671_v45   ;;  %v709_v28 = vmul.f32 1.442695, %v687_v52  ;;  %v2455_v4 = vpop.eup %1780 }
 0x206   : > { %2935 = vst [vmem:[#allocation32_spill] sm:$0xff] %v2455_v4 }
 0x207   : > { %v640_v58 = vpop.xlane.xlu1 %639  ;;  %1782 = vpow2.f32 %v709_v28 }
 0x208   : > { %v672_v10 = vmax.f32 %v2435_v32, %v640_v58 }
 0x209   : > { %v2438_v29 = vpop.f32.mrf.mxu0  ;;  %v2440_v1 = vpop.f32.mrf.mxu1 }
 0x20a   : > { %1299 = vst.msk [vmem:[#allocation2 + $0x38] sm:$0xff] %vm242_vm8, %v672_v10 }
 0x20d   : > { %766 = vperm.xlu2 %1765, %v672_v10   ;;  %1056 = vperm.xlu1 %1766, %v2443_v44   ;;  %v707_v44 = vmul.f32 1.442695, %v686_v46  ;;  %v2463_v7 = vpop.eup %1782 }
 0x20e   : > { %2936 = vst [vmem:[#allocation33_spill] sm:$0xff] %v2463_v7 }
 0x20f   : > { %1784 = vpow2.f32 %v707_v44 }
 0x210   : > { %v643_v13 = vpop.xlane.xlu2 %642 }
 0x211   : > { %v673_v19 = vmax.f32 %v609_v51, %v643_v13  ;;  %v2446_v41 = vpop.f32.mrf.mxu0  ;;  %v2448_v58 = vpop.f32.mrf.mxu1 }
 0x213   : > { %1300 = vst.msk [vmem:[#allocation2 + $0x40] sm:$0xff] %vm242_vm8, %v673_v19  ;;  %v689_v28 = vsub.f32 %v609_v51, %v673_v19  ;;  %v612_v51 = vld [vmem:[#allocation2 + $0x58] sm:$0xff] }
 0x215   : > { %1051 = vperm.xlu2 %1765, %v2455_v4   ;;  %771 = vperm.xlu1 %1766, %v673_v19   ;;  %v713_v44 = vmul.f32 1.442695, %v689_v28  ;;  %v688_v19 = vsub.f32 %v2435_v32, %v672_v10 }
 0x217   : > { %v646_v45 = vpop.xlane.xlu1 %645  ;;  %v711_v28 = vmul.f32 1.442695, %v688_v19 }
 0x218   : > { %v674_v13 = vmax.f32 %v610_v16, %v646_v45 }
 0x219   : > { %v2458_v52 = vpop.f32.mrf.mxu0  ;;  %v2460_v43 = vpop.f32.mrf.mxu1 }
 0x21a   : > { %v690_v36 = vsub.f32 %v610_v16, %v674_v13  ;;  %1301 = vst.msk [vmem:[#allocation2 + $0x48] sm:$0xff] %vm242_vm8, %v674_v13 }
 0x21c   : > { %v715_v42 = vmul.f32 1.442695, %v690_v36  ;;  %v2474_v36 = vpop.eup %1784 }
 0x21d   : > { %776 = vperm.xlu2 %1765, %v674_v13   ;;  %1066 = vperm.xlu1 %1766, %v2463_v7   ;;  %2937 = vst [vmem:[#allocation34_spill] sm:$0xff] %v2474_v36 }
 0x21e   : > { %1786 = vpow2.f32 %v715_v42 }
 0x21f   : > { %1788 = vpow2.f32 %v713_v44 }
 0x220   : > { %v649_v53 = vpop.xlane.xlu2 %648  ;;  %1790 = vpow2.f32 %v711_v28  ;;  %v614_v28 = vld [vmem:[#allocation2 + $0x68] sm:$0xff] }
 0x221   : > { %v675_v45 = vmax.f32 %v611_v50, %v649_v53  ;;  %v2466_v46 = vpop.f32.mrf.mxu0  ;;  %v2468_v4 = vpop.f32.mrf.mxu1 }
 0x223   : > { %1302 = vst.msk [vmem:[#allocation2 + $0x50] sm:$0xff] %vm242_vm8, %v675_v45 }
 0x224   : > { %v2477_v42 = vpop.eup %1786 }
 0x225   : > { %2938 = vst [vmem:[#allocation35_spill] sm:$0xff] %v2477_v42  ;;  %1061 = vperm.xlu2 %1765, %v2474_v36   ;;  %1081 = vperm.xlu0 %1767, %v2477_v42   ;;  %v2487_v7 = vpop.eup %1788  ;;  %v613_v42 = vld [vmem:[#allocation2 + $0x60] sm:$0xff] }
 0x226   : > { %781 = vperm.xlu1 %1766, %v675_v45   ;;  %2939 = vst [vmem:[#allocation36_spill] sm:$0xff] %v2487_v7  ;;  %v2495_v19 = vpop.eup %1790 }
 0x227   : > { %v652_v13 = vpop.xlane.xlu1 %651  ;;  %2940 = vst [vmem:[#allocation37_spill] sm:$0xff] %v2495_v19 }
 0x228   : > { %v676_v53 = vmax.f32 %v612_v51, %v652_v13 }
 0x229   : > { %v2482_v16 = vpop.f32.mrf.mxu0  ;;  %v2484_v49 = vpop.f32.mrf.mxu1 }
 0x22a   : > { %1303 = vst.msk [vmem:[#allocation2 + $0x58] sm:$0xff] %vm242_vm8, %v676_v53  ;;  %v692_v36 = vsub.f32 %v612_v51, %v676_v53  ;;  %v691_v51 = vsub.f32 %v611_v50, %v675_v45 }
 0x22c   : > { %v719_v48 = vmul.f32 1.442695, %v692_v36  ;;  %v717_v37 = vmul.f32 1.442695, %v691_v51 }
 0x22d   : > { %786 = vperm.xlu2 %1765, %v676_v53  }
 0x22e   : > { %1076 = vperm.xlu1 %1766, %v2487_v7   ;;  %1792 = vpow2.f32 %v719_v48 }
 0x230   : > { %v655_v32 = vpop.xlane.xlu2 %654 }
 0x231   : > { %v677_v10 = vmax.f32 %v613_v42, %v655_v32  ;;  %v2490_v44 = vpop.f32.mrf.mxu0  ;;  %v2492_v13 = vpop.f32.mrf.mxu1 }
 0x233   : > { %v693_v34 = vsub.f32 %v613_v42, %v677_v10  ;;  %1304 = vst.msk [vmem:[#allocation2 + $0x60] sm:$0xff] %vm242_vm8, %v677_v10 }
 0x234   : > { %v2499_v36 = vpop.eup %1792 }
 0x235   : > { %v721_v33 = vmul.f32 1.442695, %v693_v34  ;;  %1071 = vperm.xlu2 %1765, %v2495_v19   ;;  %2941 = vst [vmem:[#allocation38_spill] sm:$0xff] %v2499_v36  ;;  %v615_v34 = vld [vmem:[#allocation2 + $0x70] sm:$0xff] }
 0x236   : > { %791 = vperm.xlu1 %1766, %v677_v10  }
 0x237   : > { %1794 = vpow2.f32 %v721_v33  ;;  %v658_v53 = vpop.xlane.xlu1 %657 }
 0x238   : > { %v678_v32 = vmax.f32 %v614_v28, %v658_v53  ;;  %1796 = vpow2.f32 %v717_v37 }
 0x239   : > { %v502_v7 = vpop.f32.mrf.mxu0  ;;  %v591_v38 = vpop.f32.mrf.mxu1 }
 0x23a   : > { %1305 = vst.msk [vmem:[#allocation2 + $0x68] sm:$0xff] %vm242_vm8, %v678_v32  ;;  %v694_v53 = vsub.f32 %v614_v28, %v678_v32 }
 0x23c   : > { %v723_v26 = vmul.f32 1.442695, %v694_v53 }
 0x23d   : > { %v2501_v42 = vpop.eup %1794  ;;  %796 = vperm.xlu2 %1765, %v678_v32  }
 0x23e   : > { %2942 = vst [vmem:[#allocation39_spill] sm:$0xff] %v2501_v42  ;;  %1096 = vperm.xlu0 %1767, %v2501_v42   ;;  %1091 = vperm.xlu1 %1766, %v2499_v36   ;;  %v2506_v51 = vpop.eup %1796 }
 0x240   : > { %v661_v48 = vpop.xlane.xlu2 %660 }
 0x241   : > { %v679_v33 = vmax.f32 %v615_v34, %v661_v48  ;;  %v504_v50 = vpop.f32.mrf.mxu0  ;;  %v593_v45 = vpop.f32.mrf.mxu1 }
 0x243   : > { %v695_v10 = vsub.f32 %v615_v34, %v679_v33  ;;  %1306 = vst.msk [vmem:[#allocation2 + $0x70] sm:$0xff] %vm242_vm8, %v679_v33 }
 0x245   : > { %v725_v19 = vmul.f32 1.442695, %v695_v10  ;;  %1086 = vperm.xlu2 %1765, %v2506_v51  }
 0x246   : > { %801 = vperm.xlu1 %1766, %v679_v33  }
 0x247   : > { %1798 = vpow2.f32 %v725_v19  ;;  %v664_v37 = vpop.xlane.xlu1 %663 }
 0x248   : > { %v680_v42 = vmax.f32 %v616_v27, %v664_v37  ;;  %v732_v36 = vpop.permute.xlu2 %731  ;;  %1800 = vpow2.f32 %v723_v26 }
 0x249   : > { %v507_v31 = vpop.f32.mrf.mxu0  ;;  %v596_v48 = vpop.f32.mrf.mxu1 }
 0x24a   : > { %v696_v30 = vsub.f32 %v616_v27, %v680_v42  ;;  %1307 = vst.msk [vmem:[#allocation2 + $0x78] sm:$0xff] %vm242_vm8, %v680_v42  ;;  %v1158_v27 = vpack.c.bf16 %v504_v50, %v502_v7 }
 0x24c   : > { %v727_v34 = vmul.f32 1.442695, %v696_v30  ;;  %v1159_v30 = vpack.c.bf16 %v593_v45, %v591_v38 }
 0x24d   : > { %v2510_v55 = vpop.eup %1798  ;;  %806 = vperm.xlu2 %1765, %v680_v42  }
 0x24e   : > { %1802 = vpow2.f32 %v727_v34  ;;  %1106 = vperm.xlu1 %1766, %v2510_v55   ;;  %v2513_v37 = vpop.eup %1800 }
 0x250   : > { %v742_v28 = vpop.permute.xlu2 %741 }
 0x251   : > { %v509_v32 = vpop.f32.mrf.mxu0  ;;  %v598_v19 = vpop.f32.mrf.mxu1 }
 0x252   : > { %v1160_v33 = vpack.c.bf16 %v509_v32, %v507_v31  ;;  %v1161_v10 = vpack.c.bf16 %v598_v19, %v596_v48  ;;  %v1156_v31 = vpack.c.bf16 %v2490_v44, %v2482_v16  ;;  %v1157_v48 = vpack.c.bf16 %v2492_v13, %v2484_v49 }
 0x253   : > { %v809_v32 = vsub.f32 %v2235_v60, %v732_v36  ;;  %v810_v19 = vsub.f32 %v2237_v61, %v732_v36  ;;  %v813_v16 = vsub.f32 %v2249_v2, %v742_v28  ;;  %v2943_v49 = vpack.c.bf16 %v2466_v46, %v2458_v52 }
 0x254   : > { %v2515_v53 = vpop.eup %1802  ;;  %1162 = vmatpush.bf16.xpose.msra.mxu2 %v1160_v33  ;;  %1211 = vmatpush.bf16.xpose.msra.mxu3 %v1161_v10  ;;  %v2944_v60 = vpack.c.bf16 %v2468_v4, %v2460_v43  ;;  %v814_v61 = vsub.f32 %v2251_v3, %v742_v28  ;;  %v2945_v4 = vpack.c.bf16 %v2446_v41, %v2438_v29 }
 0x255   : > { %1101 = vperm.xlu2 %1765, %v2513_v37   ;;  %1111 = vperm.xlu0 %1767, %v2515_v53   ;;  %v841_v7 = vmul.f32 1.442695, %v809_v32  ;;  %v843_v50 = vmul.f32 1.442695, %v810_v19  ;;  %v2946_v46 = vpack.c.bf16 %v2448_v58, %v2440_v1 }
 0x257   : > { %1804 = vpow2.f32 %v841_v7  ;;  %v2948_v7 = vpack.c.bf16 %v2425_v35, %v2417_v57 }
 0x258   : > { %v747_v26 = vpop.permute.xlu2 %746  ;;  %1806 = vpow2.f32 %v843_v50 }
 0x259   : > { %v815_v2 = vsub.f32 %v2257_v5, %v747_v26  ;;  %v816_v43 = vsub.f32 %v2259_v6, %v747_v26 }
 0x25b   : > { %v853_v28 = vmul.f32 1.442695, %v815_v2  ;;  %v855_v6 = vmul.f32 1.442695, %v816_v43 }
 0x25c   : > { %1163 = vmatpush.bf16.xpose.msra.mxu2 %v1158_v27  ;;  %1212 = vmatpush.bf16.xpose.msra.mxu3 %v1159_v30  ;;  %v851_v27 = vmul.f32 1.442695, %v814_v61  ;;  %v2949_v61 = vpack.c.bf16 %v2406_v39, %v2398_v22 }
 0x25d   : > { %v2541_v30 = vpop.eup %1804 }
 0x25e   : > { %v2544_v52 = vpop.eup %1806 }
 0x25f   : > { %v737_v42 = vpop.permute.xlu1 %736 }
 0x260   : > { %v2519_v34 = vpop.permute.xlu2 %756  ;;  %v811_v45 = vsub.f32 %v2243_v63, %v737_v42  ;;  %v812_v10 = vsub.f32 %v2245_v0, %v737_v42  ;;  %v849_v63 = vmul.f32 1.442695, %v813_v16  ;;  %v937_v42 = vadd.f32 %v2544_v52, %v2541_v30 }
 0x261   : > { %v820_v32 = vsub.f32 %v2273_v12, %v2519_v34 }
 0x262   : > { %v845_v44 = vmul.f32 1.442695, %v811_v45  ;;  %v847_v13 = vmul.f32 1.442695, %v812_v10 }
 0x264   : > { %1164 = vmatpush.bf16.xpose.msra.mxu2 %v1156_v31  ;;  %1213 = vmatpush.bf16.xpose.msra.mxu3 %v1157_v48  ;;  %1808 = vpow2.f32 %v845_v44  ;;  %v2950_v44 = vpack.c.bf16 %v2408_v40, %v2400_v25 }
 0x265   : > { %1810 = vpow2.f32 %v847_v13 }
 0x266   : > { %1812 = vpow2.f32 %v849_v63 }
 0x267   : > { %v752_v33 = vpop.permute.xlu1 %751  ;;  %1814 = vpow2.f32 %v851_v27 }
 0x268   : > { %v2527_v38 = vpop.permute.xlu2 %1036  ;;  %v817_v3 = vsub.f32 %v2263_v8, %v752_v33  ;;  %v818_v5 = vsub.f32 %v2265_v9, %v752_v33  ;;  %1816 = vpow2.f32 %v853_v28  ;;  %v819_v9 = vsub.f32 %v2271_v11, %v2519_v34 }
 0x269   : > { %1818 = vpow2.f32 %v855_v6  ;;  %v2947_v33 = vpack.c.bf16 %v2423_v47, %v2415_v56 }
 0x26a   : > { %v2557_v31 = vpop.eup %1808  ;;  %v857_v8 = vmul.f32 1.442695, %v817_v3  ;;  %v859_v41 = vmul.f32 1.442695, %v818_v5  ;;  %v861_v45 = vmul.f32 1.442695, %v819_v9 }
 0x26b   : > { %v2561_v29 = vpop.eup %1810 }
 0x26c   : > { %1165 = vmatpush.bf16.xpose.msra.mxu2 %v2943_v49  ;;  %1214 = vmatpush.bf16.xpose.msra.mxu3 %v2944_v60  ;;  %v2563_v1 = vpop.eup %1812  ;;  %1820 = vpow2.f32 %v857_v8  ;;  %v940_v11 = vadd.f32 %v2561_v29, %v2557_v31 }
 0x26d   : > { %v2567_v58 = vpop.eup %1814  ;;  %1822 = vpow2.f32 %v859_v41  ;;  %v1131_v41 = vpack.c.bf16 %v2561_v29, %v2544_v52 }
 0x26e   : > { %v943_v12 = vadd.f32 %v2567_v58, %v2563_v1  ;;  %v2585_v56 = vpop.eup %1816  ;;  %1824 = vpow2.f32 %v861_v45 }
 0x26f   : > { %v2539_v36 = vpop.permute.xlu1 %1041  ;;  %v2587_v35 = vpop.eup %1818 }
 0x270   : > { %v767_v0 = vpop.permute.xlu2 %766  ;;  %v946_v13 = vadd.f32 %v2587_v35, %v2585_v56 }
 0x271   : > { %v824_v60 = vsub.f32 %v2287_v18, %v767_v0 }
 0x272   : > { %v2589_v16 = vpop.eup %1820 }
 0x273   : > { %v2592_v49 = vpop.eup %1822  ;;  %v871_v27 = vmul.f32 1.442695, %v824_v60 }
 0x274   : > { %1166 = vmatpush.bf16.xpose.msra.mxu2 %v2945_v4  ;;  %1215 = vmatpush.bf16.xpose.msra.mxu3 %v2946_v46 }
 0x277   : > { %v762_v26 = vpop.permute.xlu1 %761 }
 0x278   : > { %938 = vadd.xlane.f32.xlu1 %v937_v42  ;;  %v2559_v48 = vpop.permute.xlu2 %1051  ;;  %v821_v19 = vsub.f32 %v2277_v14, %v762_v26  ;;  %v822_v50 = vsub.f32 %v2279_v15, %v762_v26  ;;  %v863_v14 = vmul.f32 1.442695, %v820_v32  ;;  %v823_v15 = vsub.f32 %v2285_v17, %v767_v0  ;;  %v2605_v0 = vpop.eup %1824  ;;  %v2954_v32 = vld [vmem:[#allocation17_spill] sm:$0xff] }
 0x279   : > { %v949_v17 = vadd.f32 %v2592_v49, %v2589_v16 }
 0x27a   : > { %v865_v47 = vmul.f32 1.442695, %v821_v19  ;;  %v867_v10 = vmul.f32 1.442695, %v822_v50  ;;  %1826 = vpow2.f32 %v863_v14  ;;  %v869_v63 = vmul.f32 1.442695, %v823_v15 }
 0x27c   : > { %1167 = vmatpush.bf16.xpose.msra.mxu2 %v2947_v33  ;;  %1216 = vmatpush.bf16.xpose.msra.mxu3 %v2948_v7  ;;  %1828 = vpow2.f32 %v865_v47  ;;  %v2955_v7 = vld [vmem:[#allocation18_spill] sm:$0xff]  ;;  %v2956_v47 = vld [vmem:[#allocation15_spill] sm:$0xff] }
 0x27d   : > { %1830 = vpow2.f32 %v867_v10  ;;  %v2957_v10 = vld [vmem:[#allocation16_spill] sm:$0xff] }
 0x27e   : > { %941 = vadd.xlane.f32.xlu2 %v940_v11  ;;  %1832 = vpow2.f32 %v869_v63 }
 0x27f   : > { %v2583_v34 = vpop.permute.xlu1 %1056  ;;  %1834 = vpow2.f32 %v871_v27 }
 0x280   : > { %944 = vadd.xlane.f32.xlu1 %v943_v12  ;;  %v777_v57 = vpop.permute.xlu2 %776  ;;  %v2611_v40 = vpop.eup %1826 }
 0x281   : > { %v827_v43 = vsub.f32 %v2299_v23, %v777_v57  ;;  %v828_v5 = vsub.f32 %v2301_v24, %v777_v57  ;;  %v952_v42 = vadd.f32 %v2611_v40, %v2605_v0 }
 0x282   : > { %v2613_v2 = vpop.eup %1828 }
 0x283   : > { %v2616_v46 = vpop.eup %1830  ;;  %v877_v23 = vmul.f32 1.442695, %v827_v43  ;;  %v879_v26 = vmul.f32 1.442695, %v828_v5 }
 0x284   : > { %1168 = vmatpush.bf16.xpose.msra.mxu2 %v2949_v61  ;;  %1217 = vmatpush.bf16.xpose.msra.mxu3 %v2950_v44  ;;  %v955_v6 = vadd.f32 %v2616_v46, %v2613_v2  ;;  %v2631_v8 = vpop.eup %1832 }
 0x286   : > { %947 = vadd.xlane.f32.xlu2 %v946_v13 }
 0x287   : > { %v772_v18 = vpop.permute.xlu1 %771 }
 0x288   : > { %v825_v22 = vsub.f32 %v2291_v20, %v772_v18  ;;  %v826_v39 = vsub.f32 %v2293_v21, %v772_v18  ;;  %950 = vadd.xlane.f32.xlu1 %v949_v17  ;;  %v2609_v25 = vpop.permute.xlu2 %1061  ;;  %v2951_v20 = vpack.c.bf16 %v2389_v59, %v2384_v54  ;;  %v2952_v21 = vld [vmem:[#allocation27_spill] sm:$0xff]  ;;  %v2633_v59 = vpop.eup %1834  ;;  %v2958_v18 = vld [vmem:[#allocation21_spill] sm:$0xff] }
 0x289   : > { %v2953_v28 = vpack.c.bf16 %v2391_v62, %v2952_v21  ;;  %v1130_v62 = vpack.c.bf16 %v2557_v31, %v2541_v30  ;;  %v958_v50 = vadd.f32 %v2633_v59, %v2631_v8 }
 0x28a   : > { %v873_v3 = vmul.f32 1.442695, %v825_v22  ;;  %v875_v4 = vmul.f32 1.442695, %v826_v39  ;;  %v2959_v39 = vld [vmem:[#allocation22_spill] sm:$0xff] }
 0x28c   : > { %1836 = vpow2.f32 %v873_v3  ;;  %1169 = vmatpush.bf16.xpose.msra.mxu2 %v2951_v20  ;;  %1218 = vmatpush.bf16.xpose.msra.mxu3 %v2953_v28  ;;  %v1132_v3 = vpack.c.bf16 %v2585_v56, %v2563_v1 }
 0x28d   : > { %1838 = vpow2.f32 %v875_v4  ;;  %v1133_v4 = vpack.c.bf16 %v2587_v35, %v2567_v58 }
 0x28e   : > { %953 = vadd.xlane.f32.xlu2 %v952_v42  ;;  %1840 = vpow2.f32 %v877_v23 }
 0x28f   : > { %v2629_v24 = vpop.permute.xlu1 %1066  ;;  %1842 = vpow2.f32 %v879_v26 }
 0x290   : > { %956 = vadd.xlane.f32.xlu1 %v955_v6  ;;  %v787_v54 = vpop.permute.xlu2 %786  ;;  %v2960_v6 = vld [vmem:[#allocation19_spill] sm:$0xff] }
 0x291   : > { %v831_v19 = vsub.f32 %v2954_v32, %v787_v54  ;;  %v832_v11 = vsub.f32 %v2955_v7, %v787_v54  ;;  %v2961_v54 = vld [vmem:[#allocation20_spill] sm:$0xff] }
 0x292   : > { %v2639_v9 = vpop.eup %1836 }
 0x293   : > { %v2642_v33 = vpop.eup %1838  ;;  %1170 = vmatmul.bf16.vlgmr.msra.gmra.mxu2 %v1130_v62  ;;  %1219 = vmatmul.bf16.vlgmr.msra.gmra.mxu3 %v1131_v41  ;;  %v885_v45 = vmul.f32 1.442695, %v831_v19  ;;  %v887_v52 = vmul.f32 1.442695, %v832_v11 }
 0x294   : > { %v961_v30 = vadd.f32 %v2642_v33, %v2639_v9  ;;  %v2649_v31 = vpop.eup %1840 }
 0x295   : > { %v2653_v14 = vpop.eup %1842  ;;  %1844 = vpow2.f32 %v885_v45 }
 0x296   : > { %959 = vadd.xlane.f32.xlu2 %v958_v50  ;;  %1846 = vpow2.f32 %v887_v52  ;;  %v964_v44 = vadd.f32 %v2653_v14, %v2649_v31  ;;  %v1135_v52 = vpack.c.bf16 %v2611_v40, %v2592_v49  ;;  %v2964_v49 = vld [vmem:[#allocation23_spill] sm:$0xff]  ;;  %v2965_v40 = vld [vmem:[#allocation24_spill] sm:$0xff] }
 0x298   : > { %v782_v29 = vpop.permute.xlu1 %781  ;;  %962 = vadd.xlane.f32.xlu1 %v961_v30  ;;  %v2651_v12 = vpop.permute.xlu2 %1071  ;;  %v1134_v30 = vpack.c.bf16 %v2605_v0, %v2589_v16 }
 0x299   : > { %v829_v57 = vsub.f32 %v2956_v47, %v782_v29  ;;  %v830_v15 = vsub.f32 %v2957_v10, %v782_v29  ;;  %v2962_v29 = vld [vmem:[#allocation25_spill] sm:$0xff] }
 0x29b   : > { %v881_v60 = vmul.f32 1.442695, %v829_v57  ;;  %v883_v61 = vmul.f32 1.442695, %v830_v15  ;;  %v2659_v13 = vpop.eup %1844  ;;  %v2963_v57 = vld [vmem:[#allocation26_spill] sm:$0xff] }
 0x29c   : > { %v2663_v27 = vpop.eup %1846 }
 0x29d   : > { %1848 = vpow2.f32 %v881_v60  ;;  %v970_v42 = vadd.f32 %v2663_v27, %v2659_v13 }
 0x29e   : > { %1850 = vpow2.f32 %v883_v61  ;;  %965 = vadd.xlane.f32.xlu2 %v964_v44 }
 0x2a0   : > { %v2661_v63 = vpop.permute.xlu1 %1076  ;;  %v797_v17 = vpop.permute.xlu2 %796 }
 0x2a1   : > { %v835_v22 = vsub.f32 %v2958_v18, %v797_v17  ;;  %v836_v43 = vsub.f32 %v2959_v39, %v797_v17 }
 0x2a3   : > { %v2671_v5 = vpop.eup %1848  ;;  %v893_v20 = vmul.f32 1.442695, %v835_v22  ;;  %v895_v21 = vmul.f32 1.442695, %v836_v43  ;;  %1175 = vmatmul.bf16.gmra.mxu2 %v1132_v3  ;;  %1224 = vmatmul.bf16.gmra.mxu3 %v1133_v4 }
 0x2a4   : > { %v2673_v28 = vpop.eup %1850  ;;  %v1140_v23 = vpack.c.bf16 %v2659_v13, %v2671_v5 }
 0x2a5   : > { %1852 = vpow2.f32 %v893_v20  ;;  %v967_v1 = vadd.f32 %v2673_v28, %v2671_v5  ;;  %v1141_v58 = vpack.c.bf16 %v2663_v27, %v2673_v28  ;;  %v1136_v5 = vpack.c.bf16 %v2631_v8, %v2613_v2 }
 0x2a6   : > { %1854 = vpow2.f32 %v895_v21  ;;  %971 = vadd.xlane.f32.xlu2 %v970_v42  ;;  %v1137_v20 = vpack.c.bf16 %v2633_v59, %v2616_v46  ;;  %v905_v46 = vld [vmem:[#allocation3] sm:$0xff] }
 0x2a7   : > { %968 = vadd.xlane.f32.xlu1 %v967_v1  ;;  %v2966_v59 = vld [vmem:[#allocation30_spill] sm:$0xff] }
 0x2a8   : > { %v792_v56 = vpop.permute.xlu1 %791  ;;  %v2683_v35 = vpop.permute.xlu2 %1086 }
 0x2a9   : > { %v833_v26 = vsub.f32 %v2960_v6, %v792_v56  ;;  %v834_v62 = vsub.f32 %v2961_v54, %v792_v56  ;;  %v1138_v6 = vpack.c.bf16 %v2649_v31, %v2639_v9  ;;  %v921_v54 = vmul.f32 %v2966_v59, %v905_v46  ;;  %v907_v9 = vld [vmem:[#allocation3 + $0x10] sm:$0xff]  ;;  %v2967_v31 = vld [vmem:[#allocation29_spill] sm:$0xff] }
 0x2ab   : > { %v2687_v41 = vpop.eup %1852  ;;  %v889_v32 = vmul.f32 1.442695, %v833_v26  ;;  %v891_v19 = vmul.f32 1.442695, %v834_v62  ;;  %v1139_v26 = vpack.c.bf16 %v2653_v14, %v2642_v33 }
 0x2ac   : > { %v2689_v7 = vpop.eup %1854 }
 0x2ad   : > { %1856 = vpow2.f32 %v889_v32  ;;  %v976_v11 = vadd.f32 %v2689_v7, %v2687_v41  ;;  %v906_v32 = vld [vmem:[#allocation3 + $0x8] sm:$0xff] }
 0x2ae   : > { %1858 = vpow2.f32 %v891_v19  ;;  %v922_v19 = vmul.f32 %v2967_v31, %v906_v32 }
 0x2af   : > { %977 = vadd.xlane.f32.xlu2 %v976_v11 }
 0x2b0   : > { %v2693_v50 = vpop.permute.xlu1 %1091  ;;  %v807_v45 = vpop.permute.xlu2 %806 }
 0x2b1   : > { %v839_v47 = vsub.f32 %v2962_v29, %v807_v45  ;;  %v840_v10 = vsub.f32 %v2963_v57, %v807_v45  ;;  %v2969_v29 = vld [vmem:[#allocation32_spill] sm:$0xff] }
 0x2b3   : > { %v1857_v15 = vpop.eup %1856  ;;  %1180 = vmatmul.bf16.gmra.mxu2 %v1134_v30  ;;  %1229 = vmatmul.bf16.gmra.mxu3 %v1135_v52  ;;  %v901_v61 = vmul.f32 1.442695, %v839_v47  ;;  %v903_v44 = vmul.f32 1.442695, %v840_v10  ;;  %v909_v52 = vld [vmem:[#allocation3 + $0x20] sm:$0xff] }
 0x2b4   : > { %v1859_v60 = vpop.eup %1858  ;;  %v1142_v13 = vpack.c.bf16 %v2687_v41, %v1857_v15 }
 0x2b5   : > { %v973_v17 = vadd.f32 %v1859_v60, %v1857_v15  ;;  %v1143_v27 = vpack.c.bf16 %v2689_v7, %v1859_v60  ;;  %1860 = vpow2.f32 %v901_v61  ;;  %v2968_v7 = vld [vmem:[#allocation28_spill] sm:$0xff]  ;;  %v2970_v15 = vld [vmem:[#allocation31_spill] sm:$0xff] }
 0x2b6   : > { %1862 = vpow2.f32 %v903_v44  ;;  %v923_v11 = vmul.f32 %v2968_v7, %v907_v9  ;;  %v925_v60 = vmul.f32 %v2970_v15, %v909_v52  ;;  %v915_v15 = vld [vmem:[#allocation3 + $0x50] sm:$0xff] }
 0x2b7   : > { %974 = vadd.xlane.f32.xlu1 %v973_v17 }
 0x2b8   : > { %v802_v16 = vpop.permute.xlu1 %801  ;;  %v2723_v8 = vpop.permute.xlu2 %1101 }
 0x2b9   : > { %v837_v0 = vsub.f32 %v2964_v49, %v802_v16  ;;  %v838_v18 = vsub.f32 %v2965_v40, %v802_v16  ;;  %v911_v49 = vld [vmem:[#allocation3 + $0x30] sm:$0xff] }
 0x2bb   : > { %v897_v22 = vmul.f32 1.442695, %v837_v0  ;;  %v899_v39 = vmul.f32 1.442695, %v838_v18  ;;  %v2705_v43 = vpop.eup %1860  ;;  %v2971_v0 = vld [vmem:[#allocation34_spill] sm:$0xff] }
 0x2bc   : > { %v2707_v3 = vpop.eup %1862 }
 0x2bd   : > { %1864 = vpow2.f32 %v897_v22  ;;  %v982_v4 = vadd.f32 %v2707_v3, %v2705_v43 }
 0x2be   : > { %1866 = vpow2.f32 %v899_v39 }
 0x2bf   : > { %983 = vadd.xlane.f32.xlu0 %v982_v4 }
 0x2c0   : > { %v2721_v2 = vpop.permute.xlu1 %1106 }
 0x2c3   : > { %v1865_v21 = vpop.eup %1864  ;;  %1185 = vmatmul.bf16.gmra.mxu2 %v1136_v5  ;;  %1234 = vmatmul.bf16.gmra.mxu3 %v1137_v20 }
 0x2c4   : > { %v1867_v28 = vpop.eup %1866  ;;  %v1144_v42 = vpack.c.bf16 %v2705_v43, %v1865_v21  ;;  %v2972_v43 = vld [vmem:[#allocation33_spill] sm:$0xff] }
 0x2c5   : > { %v979_v1 = vadd.f32 %v1867_v28, %v1865_v21  ;;  %v1145_v56 = vpack.c.bf16 %v2707_v3, %v1867_v28  ;;  %v927_v3 = vmul.f32 %v2972_v43, %v911_v49  ;;  %v912_v28 = vld [vmem:[#allocation3 + $0x38] sm:$0xff]  ;;  %v918_v43 = vld [vmem:[#allocation3 + $0x68] sm:$0xff] }
 0x2c7   : > { %980 = vadd.xlane.f32.xlu1 %v979_v1 }
 0x2d3   : > { %1190 = vmatmul.bf16.gmra.mxu2 %v1138_v6  ;;  %1239 = vmatmul.bf16.gmra.mxu3 %v1139_v26  ;;  %v913_v6 = vld [vmem:[#allocation3 + $0x40] sm:$0xff]  ;;  %v2973_v26 = vld [vmem:[#allocation37_spill] sm:$0xff] }
 0x2d4   : > { %v928_v46 = vmul.f32 %v2973_v26, %v912_v28 }
 0x2e3   : > { %1195 = vmatmul.bf16.gmra.mxu2 %v1140_v23  ;;  %1244 = vmatmul.bf16.gmra.mxu3 %v1141_v58  ;;  %v908_v58 = vld [vmem:[#allocation3 + $0x18] sm:$0xff] }
 0x2e4   : > { %v924_v47 = vmul.f32 %v2969_v29, %v908_v58  ;;  %v1047_v58 = vpop.permute.xlu0 %1046  ;;  %v916_v29 = vld [vmem:[#allocation3 + $0x58] sm:$0xff] }
 0x2eb   : > { %v939_v62 = vpop.xlane.xlu1 %938 }
 0x2ec   : > { %v985_v41 = vadd.f32 %v939_v62, %v921_v54  ;;  %v2751_v49 = vpop.permute.xlu0 %1081 }
 0x2ee   : > { %1002 = vst.msk [vmem:[#allocation3] sm:$0xff] %vm242_vm8, %v985_v41 }
 0x2f1   : > { %v942_v33 = vpop.xlane.xlu2 %941 }
 0x2f2   : > { %v986_v14 = vadd.f32 %v942_v33, %v922_v19  ;;  %v914_v19 = vld [vmem:[#allocation3 + $0x48] sm:$0xff] }
 0x2f3   : > { %v945_v45 = vpop.xlane.xlu1 %944  ;;  %1200 = vmatmul.bf16.gmra.mxu2 %v1142_v13  ;;  %1249 = vmatmul.bf16.gmra.mxu3 %v1143_v27  ;;  %v910_v27 = vld [vmem:[#allocation3 + $0x28] sm:$0xff] }
 0x2f4   : > { %1003 = vst.msk [vmem:[#allocation3 + $0x8] sm:$0xff] %vm242_vm8, %v986_v14  ;;  %v987_v23 = vadd.f32 %v945_v45, %v923_v11  ;;  %v926_v40 = vmul.f32 %v2971_v0, %v910_v27  ;;  %v2975_v14 = vld [vmem:[#allocation35_spill] sm:$0xff]  ;;  %v2759_v28 = vpop.permute.xlu0 %1096 }
 0x2f5   : > { %v1311_v30 = vld [vmem:[#allocation3] sm:$0xff]  ;;  %v930_v7 = vmul.f32 %v2975_v14, %v914_v19 }
 0x2f6   : > { %1004 = vst.msk [vmem:[#allocation3 + $0x10] sm:$0xff] %vm242_vm8, %v987_v23  ;;  %1868 = vrcp.f32 %v1311_v30 }
 0x2f9   : > { %v948_v57 = vpop.xlane.xlu2 %947 }
 0x2fa   : > { %v988_v10 = vadd.f32 %v948_v57, %v924_v47 }
 0x2fb   : > { %v951_v61 = vpop.xlane.xlu1 %950  ;;  %v1312_v44 = vld [vmem:[#allocation3 + $0x8] sm:$0xff] }
 0x2fc   : > { %v1869_v17 = vpop.eup %1868  ;;  %1005 = vst.msk [vmem:[#allocation3 + $0x18] sm:$0xff] %vm242_vm8, %v988_v10  ;;  %v989_v13 = vadd.f32 %v951_v61, %v925_v60  ;;  %1870 = vrcp.f32 %v1312_v44  ;;  %v2976_v60 = vld [vmem:[#allocation38_spill] sm:$0xff]  ;;  %v931_v44 = vmul.f32 %v2506_v51, %v915_v15  ;;  %v1115_v51 = vmul.f32 0.0, %v2539_v36  ;;  %v919_v15 = vld [vmem:[#allocation3 + $0x70] sm:$0xff] }
 0x2fd   : > { %1361 = vperm.xlu2 %1765, %v1869_v17   ;;  %v1313_v16 = vld [vmem:[#allocation3 + $0x10] sm:$0xff]  ;;  %v932_v61 = vmul.f32 %v2976_v60, %v916_v29  ;;  %v917_v36 = vld [vmem:[#allocation3 + $0x60] sm:$0xff]  ;;  %v935_v60 = vmul.f32 %v2510_v55, %v919_v15 }
 0x2fe   : > { %1006 = vst.msk [vmem:[#allocation3 + $0x20] sm:$0xff] %vm242_vm8, %v989_v13  ;;  %1872 = vrcp.f32 %v1313_v16 }
 0x301   : > { %v954_v18 = vpop.xlane.xlu2 %953 }
 0x302   : > { %v1871_v22 = vpop.eup %1870  ;;  %v990_v39 = vadd.f32 %v954_v18, %v926_v40 }
 0x303   : > { %v957_v4 = vpop.xlane.xlu1 %956  ;;  %1366 = vperm.xlu1 %1766, %v1871_v22   ;;  %1205 = vmatmul.bf16.gmra.mxu2 %v1144_v42  ;;  %v1314_v5 = vld [vmem:[#allocation3 + $0x18] sm:$0xff]  ;;  %v2974_v42 = vld [vmem:[#allocation36_spill] sm:$0xff] }
 0x304   : > { %v1873_v20 = vpop.eup %1872  ;;  %1007 = vst.msk [vmem:[#allocation3 + $0x28] sm:$0xff] %vm242_vm8, %v990_v39  ;;  %v991_v21 = vadd.f32 %v957_v4, %v927_v3  ;;  %1254 = vmatmul.bf16.gmra.mxu3 %v1145_v56  ;;  %1874 = vrcp.f32 %v1314_v5  ;;  %v929_v41 = vmul.f32 %v2974_v42, %v913_v6  ;;  %v934_v4 = vmul.f32 %v2513_v37, %v918_v43  ;;  %v2977_v37 = vld [vmem:[#allocation39_spill] sm:$0xff] }
 0x305   : > { %1371 = vperm.xlu0 %1767, %v1873_v20   ;;  %v1315_v1 = vld [vmem:[#allocation3 + $0x20] sm:$0xff]  ;;  %v933_v42 = vmul.f32 %v2977_v37, %v917_v36 }
 0x306   : > { %1008 = vst.msk [vmem:[#allocation3 + $0x30] sm:$0xff] %vm242_vm8, %v991_v21  ;;  %1876 = vrcp.f32 %v1315_v1  ;;  %v1458_v36 = vld [vmem:[#allocation10 + $0x18] sm:$0xff] }
 0x309   : > { %v960_v59 = vpop.xlane.xlu2 %959 }
 0x30a   : > { %v1875_v54 = vpop.eup %1874  ;;  %v992_v62 = vadd.f32 %v960_v59, %v928_v46 }
 0x30b   : > { %v963_v32 = vpop.xlane.xlu1 %962  ;;  %1376 = vperm.xlu2 %1765, %v1875_v54   ;;  %v1316_v9 = vld [vmem:[#allocation3 + $0x28] sm:$0xff]  ;;  %v1116_v54 = vmul.f32 0.0, %v1047_v58 }
 0x30c   : > { %v1877_v31 = vpop.eup %1876  ;;  %1009 = vst.msk [vmem:[#allocation3 + $0x38] sm:$0xff] %vm242_vm8, %v992_v62  ;;  %v993_v56 = vadd.f32 %v963_v32, %v929_v41  ;;  %1878 = vrcp.f32 %v1316_v9 }
 0x30d   : > { %1381 = vperm.xlu1 %1766, %v1877_v31   ;;  %v1317_v33 = vld [vmem:[#allocation3 + $0x30] sm:$0xff] }
 0x30e   : > { %1010 = vst.msk [vmem:[#allocation3 + $0x40] sm:$0xff] %vm242_vm8, %v993_v56  ;;  %1880 = vrcp.f32 %v1317_v33  ;;  %v2765_v56 = vpop.permute.xlu0 %1111 }
 0x311   : > { %v966_v11 = vpop.xlane.xlu2 %965 }
 0x312   : > { %v1879_v45 = vpop.eup %1878  ;;  %v994_v23 = vadd.f32 %v966_v11, %v930_v7  ;;  %v920_v11 = vld [vmem:[#allocation3 + $0x78] sm:$0xff] }
 0x313   : > { %1386 = vperm.xlu0 %1767, %v1879_v45   ;;  %v1318_v30 = vld [vmem:[#allocation3 + $0x38] sm:$0xff]  ;;  %v936_v45 = vmul.f32 %v2515_v53, %v920_v11 }
 0x314   : > { %v1881_v52 = vpop.eup %1880  ;;  %1011 = vst.msk [vmem:[#allocation3 + $0x48] sm:$0xff] %vm242_vm8, %v994_v23  ;;  %1882 = vrcp.f32 %v1318_v30 }
 0x315   : > { %1391 = vperm.xlu2 %1765, %v1881_v52   ;;  %v1319_v47 = vld [vmem:[#allocation3 + $0x40] sm:$0xff] }
 0x316   : > { %v2745_v57 = vpop.f32.mrf.mxu2  ;;  %v2747_v10 = vpop.f32.mrf.mxu3  ;;  %1884 = vrcp.f32 %v1319_v47 }
 0x317   : > { %v1221_v43 = vadd.f32 %v2747_v10, %v2745_v57 }
 0x319   : > { %v972_v17 = vpop.xlane.xlu2 %971 }
 0x31a   : > { %v1883_v13 = vpop.eup %1882  ;;  %v969_v27 = vpop.xlane.xlu1 %968  ;;  %v996_v16 = vadd.f32 %v972_v17, %v932_v61 }
 0x31b   : > { %v995_v0 = vadd.f32 %v969_v27, %v931_v44  ;;  %1396 = vperm.xlu1 %1766, %v1883_v13   ;;  %v1320_v40 = vld [vmem:[#allocation3 + $0x48] sm:$0xff] }
 0x31c   : > { %v1885_v18 = vpop.eup %1884  ;;  %1013 = vst.msk [vmem:[#allocation3 + $0x58] sm:$0xff] %vm242_vm8, %v996_v16  ;;  %1886 = vrcp.f32 %v1320_v40 }
 0x31d   : > { %1012 = vst.msk [vmem:[#allocation3 + $0x50] sm:$0xff] %vm242_vm8, %v995_v0  ;;  %1401 = vperm.xlu0 %1767, %v1885_v18  }
 0x31e   : > { %v1173_v22 = vpop.f32.mrf.mxu2  ;;  %v1222_v39 = vpop.f32.mrf.mxu3 }
 0x31f   : > { %v1223_v3 = vadd.f32 %v1222_v39, %v1173_v22 }
 0x321   : > { %v2757_v5 = vadd.f32 %v1223_v3, %v1115_v51  ;;  %v1114_v51 = vmul.f32 0.0, %v2527_v38  ;;  %v1117_v38 = vmul.f32 0.0, %v2559_v48  ;;  %v1461_v48 = vld [vmem:[#allocation10 + $0x30] sm:$0xff] }
 0x322   : > { %v1887_v20 = vpop.eup %1886  ;;  %v978_v21 = vpop.xlane.xlu2 %977 }
 0x323   : > { %v998_v1 = vadd.f32 %v978_v21, %v934_v4  ;;  %1406 = vperm.xlu2 %1765, %v1887_v20   ;;  %v1322_v6 = vld [vmem:[#allocation3 + $0x58] sm:$0xff]  ;;  %v1260_v20 = vadd.f32 %v1221_v43, %v1114_v51  ;;  %v1455_v21 = vld [vmem:[#allocation10] sm:$0xff] }
 0x324   : > { %v1321_v26 = vld [vmem:[#allocation3 + $0x50] sm:$0xff]  ;;  %1888 = vrcp.f32 %v1322_v6 }
 0x325   : > { %1015 = vst.msk [vmem:[#allocation3 + $0x68] sm:$0xff] %vm242_vm8, %v998_v1  ;;  %1890 = vrcp.f32 %v1321_v26 }
 0x326   : > { %v1176_v46 = vpop.f32.mrf.mxu2  ;;  %v1225_v59 = vpop.f32.mrf.mxu3 }
 0x327   : > { %v1226_v62 = vadd.f32 %v1225_v59, %v1176_v46 }
 0x329   : > { %v2763_v41 = vadd.f32 %v1226_v62, %v1116_v54 }
 0x32a   : > { %v1889_v32 = vpop.eup %1888  ;;  %v975_v9 = vpop.xlane.xlu1 %974 }
 0x32b   : > { %v1891_v31 = vpop.eup %1890  ;;  %v997_v19 = vadd.f32 %v975_v9, %v933_v42  ;;  %1416 = vperm.xlu0 %1767, %v1889_v32  }
 0x32c   : > { %1411 = vperm.xlu1 %1766, %v1891_v31   ;;  %v1324_v33 = vld [vmem:[#allocation3 + $0x68] sm:$0xff]  ;;  %v1120_v31 = vmul.f32 0.0, %v2629_v24 }
 0x32d   : > { %1014 = vst.msk [vmem:[#allocation3 + $0x60] sm:$0xff] %vm242_vm8, %v997_v19  ;;  %1892 = vrcp.f32 %v1324_v33 }
 0x32e   : > { %v1178_v14 = vpop.f32.mrf.mxu2  ;;  %v1227_v7 = vpop.f32.mrf.mxu3 }
 0x32f   : > { %v1228_v57 = vadd.f32 %v1227_v7, %v1178_v14 }
 0x331   : > { %v1263_v10 = vadd.f32 %v1228_v57, %v1117_v38 }
 0x332   : > { %v984_v58 = vpop.xlane.xlu0 %983 }
 0x333   : > { %v1893_v23 = vpop.eup %1892  ;;  %v1000_v30 = vadd.f32 %v984_v58, %v936_v45 }
 0x334   : > { %1426 = vperm.xlu1 %1766, %v1893_v23   ;;  %v1323_v52 = vld [vmem:[#allocation3 + $0x60] sm:$0xff]  ;;  %v1456_v23 = vld [vmem:[#allocation10 + $0x8] sm:$0xff] }
 0x335   : > { %1894 = vrcp.f32 %v1323_v52  ;;  %1017 = vst.msk [vmem:[#allocation3 + $0x78] sm:$0xff] %vm242_vm8, %v1000_v30  ;;  %v1457_v52 = vld [vmem:[#allocation10 + $0x10] sm:$0xff] }
 0x336   : > { %v2770_v29 = vpop.f32.mrf.mxu2  ;;  %v2772_v47 = vpop.f32.mrf.mxu3 }
 0x33a   : > { %v981_v61 = vpop.xlane.xlu1 %980 }
 0x33b   : > { %v1895_v44 = vpop.eup %1894  ;;  %v999_v17 = vadd.f32 %v981_v61, %v935_v60 }
 0x33c   : > { %1421 = vperm.xlu2 %1765, %v1895_v44   ;;  %v1326_v53 = vld [vmem:[#allocation3 + $0x78] sm:$0xff] }
 0x33d   : > { %1016 = vst.msk [vmem:[#allocation3 + $0x70] sm:$0xff] %vm242_vm8, %v999_v17  ;;  %1896 = vrcp.f32 %v1326_v53  ;;  %v1123_v53 = vmul.f32 0.0, %v2751_v49 }
 0x33e   : > { %v2776_v13 = vpop.f32.mrf.mxu2  ;;  %v2778_v27 = vpop.f32.mrf.mxu3 }
 0x33f   : > { %v1233_v49 = vadd.f32 %v2778_v27, %v2776_v13  ;;  %v1121_v13 = vmul.f32 0.0, %v2651_v12 }
 0x343   : > { %v1897_v16 = vpop.eup %1896 }
 0x344   : > { %v1325_v0 = vld [vmem:[#allocation3 + $0x70] sm:$0xff]  ;;  %1436 = vperm.xlu2 %1765, %v1897_v16   ;;  %v1231_v16 = vadd.f32 %v2772_v47, %v2770_v29  ;;  %v1119_v47 = vmul.f32 0.0, %v2609_v25  ;;  %v1122_v25 = vmul.f32 0.0, %v2661_v63 }
 0x345   : > { %1898 = vrcp.f32 %v1325_v0 }
 0x346   : > { %v1186_v40 = vpop.f32.mrf.mxu2  ;;  %v1235_v18 = vpop.f32.mrf.mxu3 }
 0x347   : > { %v1236_v9 = vadd.f32 %v1235_v18, %v1186_v40  ;;  %v1118_v40 = vmul.f32 0.0, %v2583_v34  ;;  %v1464_v18 = vld [vmem:[#allocation10 + $0x48] sm:$0xff] }
 0x349   : > { %v1266_v33 = vadd.f32 %v1236_v9, %v1120_v31  ;;  %v1264_v51 = vadd.f32 %v1231_v16, %v1118_v40  ;;  %v1466_v16 = vld [vmem:[#allocation10 + $0x58] sm:$0xff] }
 0x34b   : > { %v1899_v55 = vpop.eup %1898 }
 0x34c   : > { %1431 = vperm.xlu0 %1767, %v1899_v55  }
 0x34e   : > { %v2780_v22 = vpop.f32.mrf.mxu2  ;;  %v2782_v39 = vpop.f32.mrf.mxu3 }
 0x34f   : > { %v1238_v38 = vadd.f32 %v2782_v39, %v2780_v22 }
 0x356   : > { %v2787_v3 = vpop.f32.mrf.mxu2  ;;  %v2789_v4 = vpop.f32.mrf.mxu3 }
 0x357   : > { %v1362_v1 = vpop.permute.xlu2 %1361  ;;  %v1241_v27 = vadd.f32 %v2789_v4, %v2787_v3  ;;  %v1126_v3 = vmul.f32 0.0, %v2759_v28  ;;  %v1467_v4 = vld [vmem:[#allocation10 + $0x60] sm:$0xff]  ;;  %v1129_v28 = vmul.f32 0.0, %v2765_v56 }
 0x358   : > { %v1439_v6 = vmul.f32 %v1362_v1, %v1260_v20  ;;  %v1459_v20 = vld [vmem:[#allocation10 + $0x20] sm:$0xff] }
 0x35a   : > { %v1471_v26 = vmul.f32 %v1455_v21, %v1439_v6 }
 0x35c   : > { %1487 = vst [vmem:[%s2792_s21] sm:$0xff] %v1471_v26  ;;  %v1265_v26 = vadd.f32 %v1233_v49, %v1119_v47 }
 0x35e   : > { %v1193_v46 = vpop.f32.mrf.mxu2  ;;  %v1242_v59 = vpop.f32.mrf.mxu3 }
 0x35f   : > { %v1243_v60 = vadd.f32 %v1242_v59, %v1193_v46  ;;  %v1460_v46 = vld [vmem:[#allocation10 + $0x28] sm:$0xff] }
 0x365   : > { %v1377_v54 = vpop.permute.xlu2 %1376 }
 0x366   : > { %v1442_v62 = vmul.f32 %v1377_v54, %v1263_v10  ;;  %v2796_v37 = vpop.f32.mrf.mxu2  ;;  %v2798_v42 = vpop.f32.mrf.mxu3  ;;  %v1267_v54 = vadd.f32 %v1238_v38, %v1121_v13 }
 0x368   : > { %v1474_v32 = vmul.f32 %v1458_v36, %v1442_v62 }
 0x36a   : > { %1490 = vst [vmem:[%s2792_s21 + $0x18] sm:$0xff] %v1474_v32  ;;  %v1462_v32 = vld [vmem:[#allocation10 + $0x38] sm:$0xff] }
 0x36e   : > { %v2802_v19 = vpop.f32.mrf.mxu2  ;;  %v2804_v14 = vpop.f32.mrf.mxu3 }
 0x36f   : > { %v1392_v7 = vpop.permute.xlu2 %1391 }
 0x370   : > { %v1445_v11 = vmul.f32 %v1392_v7, %v1266_v33  ;;  %v1268_v33 = vadd.f32 %v1241_v27, %v1122_v25 }
 0x372   : > { %v1477_v45 = vmul.f32 %v1461_v48, %v1445_v11  ;;  %v1463_v48 = vld [vmem:[#allocation10 + $0x40] sm:$0xff] }
 0x374   : > { %1493 = vst [vmem:[%s2792_s21 + $0x30] sm:$0xff] %v1477_v45 }
 0x375   : > { %v1367_v58 = vpop.permute.xlu1 %1366 }
 0x376   : > { %v1440_v30 = vmul.f32 %v1367_v58, %v2757_v5  ;;  %v1201_v61 = vpop.f32.mrf.mxu2  ;;  %v1250_v17 = vpop.f32.mrf.mxu3  ;;  %v1269_v5 = vadd.f32 %v1243_v60, %v1123_v53 }
 0x377   : > { %v1372_v15 = vpop.permute.xlu0 %1371  ;;  %v1251_v12 = vadd.f32 %v1250_v17, %v1201_v61 }
 0x378   : > { %v1472_v24 = vmul.f32 %v1456_v23, %v1440_v30  ;;  %v1441_v44 = vmul.f32 %v1372_v15, %v2763_v41  ;;  %v1246_v15 = vadd.f32 %v2798_v42, %v2796_v37 }
 0x379   : > { %v1272_v63 = vadd.f32 %v1251_v12, %v1126_v3 }
 0x37a   : > { %1488 = vst [vmem:[%s2792_s21 + $0x8] sm:$0xff] %v1472_v24  ;;  %v1473_v0 = vmul.f32 %v1457_v52, %v1441_v44  ;;  %v1248_v52 = vadd.f32 %v2804_v14, %v2802_v19  ;;  %v1125_v24 = vmul.f32 0.0, %v2693_v50  ;;  %v1124_v44 = vmul.f32 0.0, %v2683_v35  ;;  %v1465_v19 = vld [vmem:[#allocation10 + $0x50] sm:$0xff] }
 0x37c   : > { %1489 = vst [vmem:[%s2792_s21 + $0x10] sm:$0xff] %v1473_v0  ;;  %v1271_v17 = vadd.f32 %v1248_v52, %v1125_v24  ;;  %v1270_v53 = vadd.f32 %v1246_v15, %v1124_v44 }
 0x37d   : > { %v1407_v55 = vpop.permute.xlu2 %1406 }
 0x37e   : > { %v1448_v43 = vmul.f32 %v1407_v55, %v1269_v5  ;;  %v1203_v1 = vpop.f32.mrf.mxu2  ;;  %v1252_v6 = vpop.f32.mrf.mxu3  ;;  %v1470_v5 = vld [vmem:[#allocation10 + $0x78] sm:$0xff] }
 0x37f   : > { %v1382_v41 = vpop.permute.xlu1 %1381  ;;  %v1253_v55 = vadd.f32 %v1252_v6, %v1203_v1  ;;  %v1128_v1 = vmul.f32 0.0, %v2721_v2 }
 0x380   : > { %v1480_v21 = vmul.f32 %v1464_v18, %v1448_v43  ;;  %v1443_v29 = vmul.f32 %v1382_v41, %v1264_v51  ;;  %v1127_v51 = vmul.f32 0.0, %v2723_v8  ;;  %v1468_v41 = vld [vmem:[#allocation10 + $0x68] sm:$0xff] }
 0x382   : > { %1496 = vst [vmem:[%s2792_s21 + $0x48] sm:$0xff] %v1480_v21  ;;  %v1475_v34 = vmul.f32 %v1459_v20, %v1443_v29  ;;  %v1273_v20 = vadd.f32 %v1253_v55, %v1127_v51 }
 0x384   : > { %1491 = vst [vmem:[%s2792_s21 + $0x20] sm:$0xff] %v1475_v34  ;;  %v1469_v34 = vld [vmem:[#allocation10 + $0x70] sm:$0xff] }
 0x385   : > { %v1387_v59 = vpop.permute.xlu0 %1386 }
 0x386   : > { %v1444_v57 = vmul.f32 %v1387_v59, %v1265_v26  ;;  %v1206_v36 = vpop.f32.mrf.mxu2 }
 0x387   : > { %v1255_v62 = vpop.f32.mrf.mxu3 }
 0x388   : > { %v1476_v10 = vmul.f32 %v1460_v46, %v1444_v57  ;;  %v1256_v47 = vadd.f32 %v1255_v62, %v1206_v36 }
 0x38a   : > { %1492 = vst [vmem:[%s2792_s21 + $0x28] sm:$0xff] %v1476_v10  ;;  %v1274_v8 = vadd.f32 %v1256_v47, %v1128_v1 }
 0x38d   : > { %v1397_v9 = vpop.permute.xlu1 %1396 }
 0x38e   : > { %v1446_v31 = vmul.f32 %v1397_v9, %v1267_v54  ;;  %v1208_v23 = vpop.f32.mrf.mxu2 }
 0x38f   : > { %v1402_v22 = vpop.permute.xlu0 %1401  ;;  %v1257_v58 = vpop.f32.mrf.mxu3 }
 0x390   : > { %v1478_v39 = vmul.f32 %v1462_v32, %v1446_v31  ;;  %v1447_v7 = vmul.f32 %v1402_v22, %v1268_v33  ;;  %v1258_v61 = vadd.f32 %v1257_v58, %v1208_v23 }
 0x392   : > { %1494 = vst [vmem:[%s2792_s21 + $0x38] sm:$0xff] %v1478_v39  ;;  %v1479_v11 = vmul.f32 %v1463_v48, %v1447_v7  ;;  %v1275_v37 = vadd.f32 %v1258_v61, %v1129_v28 }
 0x394   : > { %1495 = vst [vmem:[%s2792_s21 + $0x40] sm:$0xff] %v1479_v11 }
 0x396   : > { %v1422_v45 = vpop.permute.xlu2 %1421 }
 0x397   : > { %v1451_v30 = vmul.f32 %v1422_v45, %v1272_v63 }
 0x399   : > { %v1483_v60 = vmul.f32 %v1467_v4, %v1451_v30 }
 0x39b   : > { %1499 = vst [vmem:[%s2792_s21 + $0x60] sm:$0xff] %v1483_v60 }
 0x39d   : > { %v1417_v0 = vpop.permute.xlu0 %1416 }
 0x39e   : > { %v1412_v14 = vpop.permute.xlu1 %1411  ;;  %v1450_v40 = vmul.f32 %v1417_v0, %v1271_v17  ;;  %v1437_v50 = vpop.permute.xlu2 %1436 }
 0x39f   : > { %v1449_v42 = vmul.f32 %v1412_v14, %v1270_v53  ;;  %v1454_v18 = vmul.f32 %v1437_v50, %v1275_v37 }
 0x3a0   : > { %v1482_v35 = vmul.f32 %v1466_v16, %v1450_v40 }
 0x3a1   : > { %v1481_v56 = vmul.f32 %v1465_v19, %v1449_v42  ;;  %v1486_v43 = vmul.f32 %v1470_v5, %v1454_v18 }
 0x3a2   : > { %1498 = vst [vmem:[%s2792_s21 + $0x58] sm:$0xff] %v1482_v35 }
 0x3a3   : > { %1497 = vst [vmem:[%s2792_s21 + $0x50] sm:$0xff] %v1481_v56 }
 0x3a4   : > { %1502 = vst [vmem:[%s2792_s21 + $0x78] sm:$0xff] %v1486_v43 }
 0x3a6   : > { %v1427_v49 = vpop.permute.xlu1 %1426 }
 0x3a7   : > { %v1452_v21 = vmul.f32 %v1427_v49, %v1273_v20 }
 0x3a9   : > { %v1484_v29 = vmul.f32 %v1468_v41, %v1452_v21 }
 0x3ab   : > { %1500 = vst [vmem:[%s2792_s21 + $0x68] sm:$0xff] %v1484_v29 }
 0x3be   : > { %v1432_v6 = vpop.permute.xlu0 %1431 }
 0x3bf   : > { %v1453_v26 = vmul.f32 %v1432_v6, %v1274_v8 }
 0x3c1   : > { %v1485_v46 = vmul.f32 %v1469_v34, %v1453_v26 }
 0x3c3   : > { %1501 = vst [vmem:[%s2792_s21 + $0x70] sm:$0xff] %v1485_v46 }
 0x3c4   : > { %2017 = shalt.err (!%p2014_p0)
}
 0x3c5   : > { %s2085_s7 = smov 128   ;;  %s2086_s19 = smov 8  }
 0x3c6   : > { %1685 = dma.vmem_to_hbm [thread:$0]  (%p2183_p2), %s1517_s27, 2048, %s1519_s28, %s1504_s29, %s2085_s7, %s2085_s7, %s2086_s19  }
 0x3c7 PF: > { %s1533_s20 = sand.u32 1, %s2056_s12   ;;  %p1699_p4 = pnand %p1627_p8, %p2154_p5 }
 0x3c8   : > { %s1534_s21 = scalar_lea.sflag [#allocation7], %s1533_s20 }
 0x3c9   : > { %p1700_p6 = pneg %p1699_p4 }
 0x3cb   : > { %2051 = dma.done.wait (%p1700_p6), %s1534_s21, 2048  }
 0x3cc   : > { %2053 = vsyncadd (%p1700_p6), %s1534_s21, 4294965248  ;;  %s20_s17 = sadd.s32 1, %s2076_s17   ;;  %s2978_s12 = smov %s2060_s13 }
 0x3cd   : > { %p17_p9 = scmp.ge.s32.totalorder %s20_s17, 4   ;;  %s2979_s13 = smov %s2064_s14 }
 0x3ce   : > { %s2980_s14 = smov %s2193_s25  ;;  %s2981_s15 = smov %s2072_s16 }
 0x3cf   : > { %s2982_s16 = smov %s2984_s9  ;;  %19 = sbr.rel (!%p17_p9) target bundleno = 7 (0x7), region = 93 }
 0x3d4   :  { %1540 = vsyncpa [#allocation6], 1 }
 0x3d5   :  { %1542 = vsyncpa [#allocation6 + $0x1], 1 }
 0x3d6   :  { %1543 = vsyncpa [#allocation9], 1 }
 0x3d7   :  { %1544 = vsyncpa [#allocation7], 1 }
 0x3d8   :  { %1546 = vsyncpa [#allocation7 + $0x1], 1 }

</bundles_post_ra>
